<compile_context>
chip_gen: v6e
topology: v6e:2x2x1
jax: 0.10.0
libtpu: 0.0.40
codegen_flags: <defaults>
</compile_context>

<pallas_src>
import jax
import jax.numpy as jnp
from jax.experimental import pallas as pl
from jax.experimental.pallas import tpu as pltpu

# Small shapes consistent with the module (input_dim/hidden_dim scaled down).
INPUT_DIM = 64
HIDDEN_DIM = 32
NUM_LAYERS = 2      # kernel below is written for exactly 2 stacked LSTM layers
OUT_DIM = 3
O_PAD = 128         # lane-dense padded output width for the logits store
BATCH = 2
SEQ_LEN = 8


def _personal_vad_kernel(
    x_ref,        # (T*B, D)    bf16, time-major flattened input
    mask_ref,     # (T*B, H)    f32, 1.0 where t < x_lens[b] (pre-broadcast)
    wih0_ref,     # (D, 4H)     bf16, layer-0 W_ih (pre-transposed)
    b0_ref,       # (1, 4H)     f32, b_ih0 + b_hh0
    wbig_ref,     # (2H, 8H)    bf16, [[Whh0, Wih1], [0, Whh1]]
    b1_ref,       # (1, 4H)     f32, b_ih1 + b_hh1
    fc1w_ref,     # (H, H)      bf16
    fc1b_ref,     # (1, H)      f32
    fc2w_ref,     # (H, O_PAD)  bf16, zero-padded beyond OUT_DIM
    fc2b_ref,     # (1, O_PAD)  f32, zero-padded beyond OUT_DIM
    logits_ref,   # out: (T*B, O_PAD) f32
    hn_ref,       # out: (2, B, H)    f32
    cn_ref,       # out: (2, B, H)    f32
    lstm_out_ref, # scratch VMEM: (T*B, H) f32  (masked layer-1 outputs)
):
    TB, _ = x_ref.shape
    H = fc1w_ref.shape[0]
    B = hn_ref.shape[1]
    T = TB // B

    # ---- Hoisted weight/bias/mask loads (stay resident across the loop).
    w_big = wbig_ref[...]
    b1 = b1_ref[...]
    valid_all = mask_ref[...] != 0.0                         # (T*B, H) bool

    # ---- Layer-0 input projection for ALL timesteps in one MXU matmul; the
    # (T*B, 4H) f32 result is only 2 vregs, so keep it in registers.
    xg = (jnp.dot(x_ref[...], wih0_ref[...],
                  preferred_element_type=jnp.float32) + b0_ref[...])

    def gates_to_hc(g, c_prev):
        # PyTorch gate order: i, f, g, o.  Two full-block transcendentals
        # instead of four quarter-block ones (EUP sits on the serial chain).
        sig = jax.nn.sigmoid(g)
        th = jnp.tanh(g)
        i = sig[:, 0 * H:1 * H]
        f = sig[:, 1 * H:2 * H]
        o = sig[:, 3 * H:4 * H]
        gg = th[:, 2 * H:3 * H]
        c_new = f * c_prev + i * gg
        return o * jnp.tanh(c_new), c_new

    zeros = jnp.zeros((B, H), jnp.float32)
    h0, c0, h1, c1 = zeros, zeros, zeros, zeros
    # Carried layer-0 recurrent contribution h0(t-1) @ Whh0; zero at t=0.
    g0hh = jnp.zeros((B, 4 * H), jnp.float32)

    # Static unroll over T (compile-time constant): every slice below is
    # static, so the recurrence never round-trips through VMEM.
    for t in range(T):
        valid = valid_all[t * B:(t + 1) * B, :]              # (B, H)

        # ---- LSTM layer 0 (recurrent term came from last step's fused matmul)
        g0 = xg[t * B:(t + 1) * B, :] + g0hh
        h0n, c0n = gates_to_hc(g0, c0)
        h0 = jnp.where(valid, h0n, h0)
        c0 = jnp.where(valid, c0n, c0)

        # ---- Single fused MXU matmul per step:
        #   [h0(t) | h1(t-1)] @ [[Whh0, Wih1], [0, Whh1]]
        #     = [ h0(t)@Whh0  (next step's layer-0 recurrence) | layer-1 gates ]
        lhs = jnp.concatenate([h0, h1], axis=-1).astype(jnp.bfloat16)  # (B, 2H)
        big = jnp.dot(lhs, w_big, preferred_element_type=jnp.float32)  # (B, 8H)
        g0hh = big[:, :4 * H]
        g1 = big[:, 4 * H:] + b1

        # ---- LSTM layer 1
        h1n, c1n = gates_to_hc(g1, c1)
        h1 = jnp.where(valid, h1n, h1)
        c1 = jnp.where(valid, c1n, c1)

        # pad_packed_sequence semantics: zero outputs at padded timesteps.
        lstm_out_ref[t * B:(t + 1) * B, :] = jnp.where(valid, h1, 0.0)

    # Final (h_n, c_n) written once (hidden=None -> zero-init handled above;
    # frozen updates give the state at each sequence's last valid step).
    hn_ref[0] = h0
    hn_ref[1] = h1
    cn_ref[0] = c0
    cn_ref[1] = c1

    # ---- FC head: two lane-dense (T*B, H) matmuls, full 128-lane unmasked
    # logits store (sliced back to OUT_DIM in the wrapper).
    out = lstm_out_ref[...]
    hfc = jnp.tanh(
        jnp.dot(out.astype(jnp.bfloat16), fc1w_ref[...],
                preferred_element_type=jnp.float32) + fc1b_ref[...])
    logits_ref[...] = (
        jnp.dot(hfc.astype(jnp.bfloat16), fc2w_ref[...],
                preferred_element_type=jnp.float32) + fc2b_ref[...])


def personal_vad_forward(x, x_lens, params):
    """x: (B, T, D) f32, x_lens: (B,) int32.

    Returns (logits (B, T, OUT_DIM), (h_n, c_n)) with h_n/c_n of shape
    (NUM_LAYERS, B, H), matching the PyTorch module (max(x_lens) == T here).
    """
    B, T, D = x.shape
    H = params["whh0"].shape[0]
    O = params["fc2w"].shape[1]

    # Time-major, flattened, bf16 input for the MXU.
    x_flat = jnp.transpose(x, (1, 0, 2)).reshape(T * B, D).astype(jnp.bfloat16)

    # Validity mask pre-broadcast to (T*B, H): no per-step broadcast in-kernel.
    mask = (jnp.arange(T, dtype=jnp.int32)[:, None]
            < x_lens[None, :].astype(jnp.int32)).astype(jnp.float32)   # (T, B)
    mask = jnp.broadcast_to(mask[:, :, None], (T, B, H)).reshape(T * B, H)

    # Fused recurrent weight [[Whh0, Wih1], [0, Whh1]]  (2H, 8H).
    w_big = jnp.zeros((2 * H, 8 * H), jnp.float32)
    w_big = w_big.at[:H, :4 * H].set(params["whh0"])
    w_big = w_big.at[:H, 4 * H:].set(params["wih1"])
    w_big = w_big.at[H:, 4 * H:].set(params["whh1"])

    # Zero-pad the final projection to a lane-dense 128-wide output.
    fc2w_pad = jnp.zeros((H, O_PAD), jnp.float32).at[:, :O].set(params["fc2w"])
    fc2b_pad = jnp.zeros((1, O_PAD), jnp.float32).at[:, :O].set(params["fc2b"])

    bf16 = lambda a: a.astype(jnp.bfloat16)
    vmem = pl.BlockSpec(memory_space=pltpu.MemorySpace.VMEM)

    logits_flat, h_n, c_n = pl.pallas_call(
        _personal_vad_kernel,
        out_shape=(
            jax.ShapeDtypeStruct((T * B, O_PAD), jnp.float32),
            jax.ShapeDtypeStruct((NUM_LAYERS, B, H), jnp.float32),
            jax.ShapeDtypeStruct((NUM_LAYERS, B, H), jnp.float32),
        ),
        in_specs=[vmem] * 10,
        out_specs=(vmem, vmem, vmem),
        scratch_shapes=[pltpu.VMEM((T * B, H), jnp.float32)],   # lstm outputs
    )(x_flat, mask,
      bf16(params["wih0"]), params["b0"],
      bf16(w_big), params["b1"],
      bf16(params["fc1w"]), params["fc1b"],
      bf16(fc2w_pad), fc2b_pad)

    logits = logits_flat.reshape(T, B, O_PAD)[:, :, :O]                 # (T, B, O)
    return jnp.transpose(logits, (1, 0, 2)), (h_n, c_n)


def init_params(key):
    ks = jax.random.split(key, 10)
    scale = 0.1

    def rnd(k, shape):
        return jax.random.normal(k, shape, jnp.float32) * scale

    return {
        # LSTM layer 0 (weights stored pre-transposed: x @ W)
        "wih0": rnd(ks[0], (INPUT_DIM, 4 * HIDDEN_DIM)),
        "whh0": rnd(ks[1], (HIDDEN_DIM, 4 * HIDDEN_DIM)),
        "b0":   rnd(ks[2], (1, 4 * HIDDEN_DIM)),          # = b_ih0 + b_hh0
        # LSTM layer 1
        "wih1": rnd(ks[3], (HIDDEN_DIM, 4 * HIDDEN_DIM)),
        "whh1": rnd(ks[4], (HIDDEN_DIM, 4 * HIDDEN_DIM)),
        "b1":   rnd(ks[5], (1, 4 * HIDDEN_DIM)),
        # FC head
        "fc1w": rnd(ks[6], (HIDDEN_DIM, HIDDEN_DIM)),
        "fc1b": rnd(ks[7], (1, HIDDEN_DIM)),
        "fc2w": rnd(ks[8], (HIDDEN_DIM, OUT_DIM)),
        "fc2b": rnd(ks[9], (1, OUT_DIM)),
    }


def personal_vad_reference(x, x_lens, params):
    """Pure-JAX f32 reference with identical packed-sequence masking semantics."""
    B, T, _ = x.shape
    H = HIDDEN_DIM
    h = [jnp.zeros((B, H), jnp.float32), jnp.zeros((B, H), jnp.float32)]
    c = [jnp.zeros((B, H), jnp.float32), jnp.zeros((B, H), jnp.float32)]

    def cell(x_t, hh, cc, wih, whh, b):
        g = x_t @ wih + hh @ whh + b
        i = jax.nn.sigmoid(g[:, :H])
        f = jax.nn.sigmoid(g[:, H:2 * H])
        gg = jnp.tanh(g[:, 2 * H:3 * H])
        o = jax.nn.sigmoid(g[:, 3 * H:])
        cn = f * cc + i * gg
        return o * jnp.tanh(cn), cn

    outs = []
    for t in range(T):
        m = (t < x_lens).astype(jnp.float32)[:, None]
        h0n, c0n = cell(x[:, t], h[0], c[0], params["wih0"], params["whh0"], params["b0"])
        h[0] = m * h0n + (1 - m) * h[0]
        c[0] = m * c0n + (1 - m) * c[0]
        h1n, c1n = cell(h[0], h[1], c[1], params["wih1"], params["whh1"], params["b1"])
        h[1] = m * h1n + (1 - m) * h[1]
        c[1] = m * c1n + (1 - m) * c[1]
        outs.append(m * h[1])
    out = jnp.stack(outs, axis=1)                          # (B, T, H)
    hfc = jnp.tanh(out @ params["fc1w"] + params["fc1b"])
    logits = hfc @ params["fc2w"] + params["fc2b"]
    return logits, (jnp.stack(h), jnp.stack(c))


if __name__ == "__main__":
    key = jax.random.PRNGKey(0)
    pkey, xkey = jax.random.split(key)
    params = init_params(pkey)

    x = jax.random.normal(xkey, (BATCH, SEQ_LEN, INPUT_DIM), jnp.float32)
    x_lens = jnp.array([SEQ_LEN, 5], dtype=jnp.int32)      # max(x_lens) == SEQ_LEN

    logits, (h_n, c_n) = personal_vad_forward(x, x_lens, params)
    jax.block_until_ready((logits, h_n, c_n))

    ref_logits, (ref_h, ref_c) = personal_vad_reference(x, x_lens, params)
    assert logits.shape == (BATCH, SEQ_LEN, OUT_DIM)
    assert h_n.shape == (NUM_LAYERS, BATCH, HIDDEN_DIM)
    # Tolerance loosened vs the f32 reference because MXU operands are bf16.
    assert jnp.allclose(logits, ref_logits, atol=2e-2), "logits mismatch"
    assert jnp.allclose(h_n, ref_h, atol=2e-2), "h_n mismatch"
    assert jnp.allclose(c_n, ref_c, atol=2e-2), "c_n mismatch"

    print("KERNEL_OK")
</pallas_src>

<mosaic_0001>
module attributes {stable_mosaic.version = 11 : i64} {
  func.func @_personal_vad_kernel(%arg0: memref<16x64xbf16, #tpu.memory_space<vmem>>, %arg1: memref<16x32xf32, #tpu.memory_space<vmem>>, %arg2: memref<64x128xbf16, #tpu.memory_space<vmem>>, %arg3: memref<1x128xf32, #tpu.memory_space<vmem>>, %arg4: memref<64x256xbf16, #tpu.memory_space<vmem>>, %arg5: memref<1x128xf32, #tpu.memory_space<vmem>>, %arg6: memref<32x32xbf16, #tpu.memory_space<vmem>>, %arg7: memref<1x32xf32, #tpu.memory_space<vmem>>, %arg8: memref<32x128xbf16, #tpu.memory_space<vmem>>, %arg9: memref<1x128xf32, #tpu.memory_space<vmem>>, %arg10: memref<16x128xf32, #tpu.memory_space<vmem>>, %arg11: memref<2x2x32xf32, #tpu.memory_space<vmem>>, %arg12: memref<2x2x32xf32, #tpu.memory_space<vmem>>, %arg13: memref<16x32xf32, #tpu.memory_space<vmem>>) attributes {dimension_semantics = [], scalar_prefetch = 0 : i64, scratch_operands = 1 : i64, tpu.core_type = #tpu.core_type<tc>} {
    %c0 = arith.constant 0 : index
    %c0_0 = arith.constant 0 : index
    %0 = vector.load %arg4[%c0, %c0_0] : memref<64x256xbf16, #tpu.memory_space<vmem>>, vector<64x256xbf16>
    %c0_1 = arith.constant 0 : index
    %c0_2 = arith.constant 0 : index
    %1 = vector.load %arg5[%c0_1, %c0_2] : memref<1x128xf32, #tpu.memory_space<vmem>>, vector<1x128xf32>
    %c0_3 = arith.constant 0 : index
    %c0_4 = arith.constant 0 : index
    %2 = vector.load %arg1[%c0_3, %c0_4] : memref<16x32xf32, #tpu.memory_space<vmem>>, vector<16x32xf32>
    %cst = arith.constant 0.000000e+00 : f32
    %3 = vector.broadcast %cst : f32 to vector<16x32xf32>
    %4 = arith.cmpf one, %2, %3 : vector<16x32xf32>
    %c0_5 = arith.constant 0 : index
    %c0_6 = arith.constant 0 : index
    %5 = vector.load %arg0[%c0_5, %c0_6] : memref<16x64xbf16, #tpu.memory_space<vmem>>, vector<16x64xbf16>
    %c0_7 = arith.constant 0 : index
    %c0_8 = arith.constant 0 : index
    %6 = vector.load %arg2[%c0_7, %c0_8] : memref<64x128xbf16, #tpu.memory_space<vmem>>, vector<64x128xbf16>
    %cst_9 = arith.constant dense<0.000000e+00> : vector<16x128xf32>
    %7 = tpu.matmul %5, %6, %cst_9 {dimension_numbers = #tpu.dot_dimension_numbers<[1], [0], [0], [1], [0, 0, 1, 1], [], []>} : vector<16x64xbf16>, vector<64x128xbf16>, vector<16x128xf32> -> vector<16x128xf32>
    %c0_10 = arith.constant 0 : index
    %c0_11 = arith.constant 0 : index
    %8 = vector.load %arg3[%c0_10, %c0_11] : memref<1x128xf32, #tpu.memory_space<vmem>>, vector<1x128xf32>
    %9 = vector.broadcast %8 : vector<1x128xf32> to vector<16x128xf32>
    %10 = arith.addf %7, %9 : vector<16x128xf32>
    %cst_12 = arith.constant 0.000000e+00 : f32
    %11 = vector.broadcast %cst_12 : f32 to vector<2x32xf32>
    %cst_13 = arith.constant 0.000000e+00 : f32
    %12 = vector.broadcast %cst_13 : f32 to vector<2x128xf32>
    %13 = vector.extract_strided_slice %4 {offsets = [0, 0], sizes = [2, 32], strides = [1, 1]} : vector<16x32xi1> to vector<2x32xi1>
    %14 = vector.extract_strided_slice %10 {offsets = [0, 0], sizes = [2, 128], strides = [1, 1]} : vector<16x128xf32> to vector<2x128xf32>
    %15 = arith.addf %14, %12 : vector<2x128xf32>
    %16 = arith.negf %15 : vector<2x128xf32>
    %17 = math.exp %16 : vector<2x128xf32>
    %cst_14 = arith.constant 1.000000e+00 : f32
    %18 = vector.broadcast %cst_14 : f32 to vector<2x128xf32>
    %19 = arith.addf %18, %17 : vector<2x128xf32>
    %20 = arith.divf %18, %19 : vector<2x128xf32>
    %21 = math.tanh %15 : vector<2x128xf32>
    %22 = vector.extract_strided_slice %20 {offsets = [0, 0], sizes = [2, 32], strides = [1, 1]} : vector<2x128xf32> to vector<2x32xf32>
    %23 = vector.extract_strided_slice %20 {offsets = [0, 32], sizes = [2, 32], strides = [1, 1]} : vector<2x128xf32> to vector<2x32xf32>
    %24 = vector.extract_strided_slice %20 {offsets = [0, 96], sizes = [2, 32], strides = [1, 1]} : vector<2x128xf32> to vector<2x32xf32>
    %25 = vector.extract_strided_slice %21 {offsets = [0, 64], sizes = [2, 32], strides = [1, 1]} : vector<2x128xf32> to vector<2x32xf32>
    %26 = arith.mulf %23, %11 : vector<2x32xf32>
    %27 = arith.mulf %22, %25 : vector<2x32xf32>
    %28 = arith.addf %26, %27 : vector<2x32xf32>
    %29 = math.tanh %28 : vector<2x32xf32>
    %30 = arith.mulf %24, %29 : vector<2x32xf32>
    %31 = arith.select %13, %30, %11 : vector<2x32xi1>, vector<2x32xf32>
    %32 = arith.select %13, %28, %11 : vector<2x32xi1>, vector<2x32xf32>
    %33 = tpu.concatenate %31, %11 in 1 : vector<2x32xf32>, vector<2x32xf32> -> vector<2x64xf32>
    %34 = arith.truncf %33 : vector<2x64xf32> to vector<2x64xbf16>
    %cst_15 = arith.constant dense<0.000000e+00> : vector<2x256xf32>
    %35 = tpu.matmul %34, %0, %cst_15 {dimension_numbers = #tpu.dot_dimension_numbers<[1], [0], [0], [1], [0, 0, 1, 1], [], []>} : vector<2x64xbf16>, vector<64x256xbf16>, vector<2x256xf32> -> vector<2x256xf32>
    %36 = vector.extract_strided_slice %35 {offsets = [0, 0], sizes = [2, 128], strides = [1, 1]} : vector<2x256xf32> to vector<2x128xf32>
    %37 = vector.extract_strided_slice %35 {offsets = [0, 128], sizes = [2, 128], strides = [1, 1]} : vector<2x256xf32> to vector<2x128xf32>
    %38 = vector.broadcast %1 : vector<1x128xf32> to vector<2x128xf32>
    %39 = arith.addf %37, %38 : vector<2x128xf32>
    %40 = arith.negf %39 : vector<2x128xf32>
    %41 = math.exp %40 : vector<2x128xf32>
    %cst_16 = arith.constant 1.000000e+00 : f32
    %42 = vector.broadcast %cst_16 : f32 to vector<2x128xf32>
    %43 = arith.addf %42, %41 : vector<2x128xf32>
    %44 = arith.divf %42, %43 : vector<2x128xf32>
    %45 = math.tanh %39 : vector<2x128xf32>
    %46 = vector.extract_strided_slice %44 {offsets = [0, 0], sizes = [2, 32], strides = [1, 1]} : vector<2x128xf32> to vector<2x32xf32>
    %47 = vector.extract_strided_slice %44 {offsets = [0, 32], sizes = [2, 32], strides = [1, 1]} : vector<2x128xf32> to vector<2x32xf32>
    %48 = vector.extract_strided_slice %44 {offsets = [0, 96], sizes = [2, 32], strides = [1, 1]} : vector<2x128xf32> to vector<2x32xf32>
    %49 = vector.extract_strided_slice %45 {offsets = [0, 64], sizes = [2, 32], strides = [1, 1]} : vector<2x128xf32> to vector<2x32xf32>
    %50 = arith.mulf %47, %11 : vector<2x32xf32>
    %51 = arith.mulf %46, %49 : vector<2x32xf32>
    %52 = arith.addf %50, %51 : vector<2x32xf32>
    %53 = math.tanh %52 : vector<2x32xf32>
    %54 = arith.mulf %48, %53 : vector<2x32xf32>
    %55 = arith.select %13, %54, %11 : vector<2x32xi1>, vector<2x32xf32>
    %56 = arith.select %13, %52, %11 : vector<2x32xi1>, vector<2x32xf32>
    %cst_17 = arith.constant 0.000000e+00 : f32
    %57 = vector.broadcast %cst_17 : f32 to vector<2x32xf32>
    %58 = arith.select %13, %55, %57 : vector<2x32xi1>, vector<2x32xf32>
    %c0_18 = arith.constant 0 : index
    %c0_19 = arith.constant 0 : index
    %59 = vector.load %arg13[%c0_18, %c0_19] : memref<16x32xf32, #tpu.memory_space<vmem>>, vector<2x32xf32>
    tpu.vector_store %arg13[%c0_18, %c0_19], %58 {strides = array<i32>} : memref<16x32xf32, #tpu.memory_space<vmem>>, vector<2x32xf32>,
    %60 = vector.extract_strided_slice %4 {offsets = [2, 0], sizes = [2, 32], strides = [1, 1]} : vector<16x32xi1> to vector<2x32xi1>
    %61 = vector.extract_strided_slice %10 {offsets = [2, 0], sizes = [2, 128], strides = [1, 1]} : vector<16x128xf32> to vector<2x128xf32>
    %62 = arith.addf %61, %36 : vector<2x128xf32>
    %63 = arith.negf %62 : vector<2x128xf32>
    %64 = math.exp %63 : vector<2x128xf32>
    %cst_20 = arith.constant 1.000000e+00 : f32
    %65 = vector.broadcast %cst_20 : f32 to vector<2x128xf32>
    %66 = arith.addf %65, %64 : vector<2x128xf32>
    %67 = arith.divf %65, %66 : vector<2x128xf32>
    %68 = math.tanh %62 : vector<2x128xf32>
    %69 = vector.extract_strided_slice %67 {offsets = [0, 0], sizes = [2, 32], strides = [1, 1]} : vector<2x128xf32> to vector<2x32xf32>
    %70 = vector.extract_strided_slice %67 {offsets = [0, 32], sizes = [2, 32], strides = [1, 1]} : vector<2x128xf32> to vector<2x32xf32>
    %71 = vector.extract_strided_slice %67 {offsets = [0, 96], sizes = [2, 32], strides = [1, 1]} : vector<2x128xf32> to vector<2x32xf32>
    %72 = vector.extract_strided_slice %68 {offsets = [0, 64], sizes = [2, 32], strides = [1, 1]} : vector<2x128xf32> to vector<2x32xf32>
    %73 = arith.mulf %70, %32 : vector<2x32xf32>
    %74 = arith.mulf %69, %72 : vector<2x32xf32>
    %75 = arith.addf %73, %74 : vector<2x32xf32>
    %76 = math.tanh %75 : vector<2x32xf32>
    %77 = arith.mulf %71, %76 : vector<2x32xf32>
    %78 = arith.select %60, %77, %31 : vector<2x32xi1>, vector<2x32xf32>
    %79 = arith.select %60, %75, %32 : vector<2x32xi1>, vector<2x32xf32>
    %80 = tpu.concatenate %78, %55 in 1 : vector<2x32xf32>, vector<2x32xf32> -> vector<2x64xf32>
    %81 = arith.truncf %80 : vector<2x64xf32> to vector<2x64xbf16>
    %cst_21 = arith.constant dense<0.000000e+00> : vector<2x256xf32>
    %82 = tpu.matmul %81, %0, %cst_21 {dimension_numbers = #tpu.dot_dimension_numbers<[1], [0], [0], [1], [0, 0, 1, 1], [], []>} : vector<2x64xbf16>, vector<64x256xbf16>, vector<2x256xf32> -> vector<2x256xf32>
    %83 = vector.extract_strided_slice %82 {offsets = [0, 0], sizes = [2, 128], strides = [1, 1]} : vector<2x256xf32> to vector<2x128xf32>
    %84 = vector.extract_strided_slice %82 {offsets = [0, 128], sizes = [2, 128], strides = [1, 1]} : vector<2x256xf32> to vector<2x128xf32>
    %85 = vector.broadcast %1 : vector<1x128xf32> to vector<2x128xf32>
    %86 = arith.addf %84, %85 : vector<2x128xf32>
    %87 = arith.negf %86 : vector<2x128xf32>
    %88 = math.exp %87 : vector<2x128xf32>
    %cst_22 = arith.constant 1.000000e+00 : f32
    %89 = vector.broadcast %cst_22 : f32 to vector<2x128xf32>
    %90 = arith.addf %89, %88 : vector<2x128xf32>
    %91 = arith.divf %89, %90 : vector<2x128xf32>
    %92 = math.tanh %86 : vector<2x128xf32>
    %93 = vector.extract_strided_slice %91 {offsets = [0, 0], sizes = [2, 32], strides = [1, 1]} : vector<2x128xf32> to vector<2x32xf32>
    %94 = vector.extract_strided_slice %91 {offsets = [0, 32], sizes = [2, 32], strides = [1, 1]} : vector<2x128xf32> to vector<2x32xf32>
    %95 = vector.extract_strided_slice %91 {offsets = [0, 96], sizes = [2, 32], strides = [1, 1]} : vector<2x128xf32> to vector<2x32xf32>
    %96 = vector.extract_strided_slice %92 {offsets = [0, 64], sizes = [2, 32], strides = [1, 1]} : vector<2x128xf32> to vector<2x32xf32>
    %97 = arith.mulf %94, %56 : vector<2x32xf32>
    %98 = arith.mulf %93, %96 : vector<2x32xf32>
    %99 = arith.addf %97, %98 : vector<2x32xf32>
    %100 = math.tanh %99 : vector<2x32xf32>
    %101 = arith.mulf %95, %100 : vector<2x32xf32>
    %102 = arith.select %60, %101, %55 : vector<2x32xi1>, vector<2x32xf32>
    %103 = arith.select %60, %99, %56 : vector<2x32xi1>, vector<2x32xf32>
    %cst_23 = arith.constant 0.000000e+00 : f32
    %104 = vector.broadcast %cst_23 : f32 to vector<2x32xf32>
    %105 = arith.select %60, %102, %104 : vector<2x32xi1>, vector<2x32xf32>
    %c2 = arith.constant 2 : index
    %c0_24 = arith.constant 0 : index
    %106 = vector.load %arg13[%c2, %c0_24] : memref<16x32xf32, #tpu.memory_space<vmem>>, vector<2x32xf32>
    tpu.vector_store %arg13[%c2, %c0_24], %105 {strides = array<i32>} : memref<16x32xf32, #tpu.memory_space<vmem>>, vector<2x32xf32>,
    %107 = vector.extract_strided_slice %4 {offsets = [4, 0], sizes = [2, 32], strides = [1, 1]} : vector<16x32xi1> to vector<2x32xi1>
    %108 = vector.extract_strided_slice %10 {offsets = [4, 0], sizes = [2, 128], strides = [1, 1]} : vector<16x128xf32> to vector<2x128xf32>
    %109 = arith.addf %108, %83 : vector<2x128xf32>
    %110 = arith.negf %109 : vector<2x128xf32>
    %111 = math.exp %110 : vector<2x128xf32>
    %cst_25 = arith.constant 1.000000e+00 : f32
    %112 = vector.broadcast %cst_25 : f32 to vector<2x128xf32>
    %113 = arith.addf %112, %111 : vector<2x128xf32>
    %114 = arith.divf %112, %113 : vector<2x128xf32>
    %115 = math.tanh %109 : vector<2x128xf32>
    %116 = vector.extract_strided_slice %114 {offsets = [0, 0], sizes = [2, 32], strides = [1, 1]} : vector<2x128xf32> to vector<2x32xf32>
    %117 = vector.extract_strided_slice %114 {offsets = [0, 32], sizes = [2, 32], strides = [1, 1]} : vector<2x128xf32> to vector<2x32xf32>
    %118 = vector.extract_strided_slice %114 {offsets = [0, 96], sizes = [2, 32], strides = [1, 1]} : vector<2x128xf32> to vector<2x32xf32>
    %119 = vector.extract_strided_slice %115 {offsets = [0, 64], sizes = [2, 32], strides = [1, 1]} : vector<2x128xf32> to vector<2x32xf32>
    %120 = arith.mulf %117, %79 : vector<2x32xf32>
    %121 = arith.mulf %116, %119 : vector<2x32xf32>
    %122 = arith.addf %120, %121 : vector<2x32xf32>
    %123 = math.tanh %122 : vector<2x32xf32>
    %124 = arith.mulf %118, %123 : vector<2x32xf32>
    %125 = arith.select %107, %124, %78 : vector<2x32xi1>, vector<2x32xf32>
    %126 = arith.select %107, %122, %79 : vector<2x32xi1>, vector<2x32xf32>
    %127 = tpu.concatenate %125, %102 in 1 : vector<2x32xf32>, vector<2x32xf32> -> vector<2x64xf32>
    %128 = arith.truncf %127 : vector<2x64xf32> to vector<2x64xbf16>
    %cst_26 = arith.constant dense<0.000000e+00> : vector<2x256xf32>
    %129 = tpu.matmul %128, %0, %cst_26 {dimension_numbers = #tpu.dot_dimension_numbers<[1], [0], [0], [1], [0, 0, 1, 1], [], []>} : vector<2x64xbf16>, vector<64x256xbf16>, vector<2x256xf32> -> vector<2x256xf32>
    %130 = vector.extract_strided_slice %129 {offsets = [0, 0], sizes = [2, 128], strides = [1, 1]} : vector<2x256xf32> to vector<2x128xf32>
    %131 = vector.extract_strided_slice %129 {offsets = [0, 128], sizes = [2, 128], strides = [1, 1]} : vector<2x256xf32> to vector<2x128xf32>
    %132 = vector.broadcast %1 : vector<1x128xf32> to vector<2x128xf32>
    %133 = arith.addf %131, %132 : vector<2x128xf32>
    %134 = arith.negf %133 : vector<2x128xf32>
    %135 = math.exp %134 : vector<2x128xf32>
    %cst_27 = arith.constant 1.000000e+00 : f32
    %136 = vector.broadcast %cst_27 : f32 to vector<2x128xf32>
    %137 = arith.addf %136, %135 : vector<2x128xf32>
    %138 = arith.divf %136, %137 : vector<2x128xf32>
    %139 = math.tanh %133 : vector<2x128xf32>
    %140 = vector.extract_strided_slice %138 {offsets = [0, 0], sizes = [2, 32], strides = [1, 1]} : vector<2x128xf32> to vector<2x32xf32>
    %141 = vector.extract_strided_slice %138 {offsets = [0, 32], sizes = [2, 32], strides = [1, 1]} : vector<2x128xf32> to vector<2x32xf32>
    %142 = vector.extract_strided_slice %138 {offsets = [0, 96], sizes = [2, 32], strides = [1, 1]} : vector<2x128xf32> to vector<2x32xf32>
    %143 = vector.extract_strided_slice %139 {offsets = [0, 64], sizes = [2, 32], strides = [1, 1]} : vector<2x128xf32> to vector<2x32xf32>
    %144 = arith.mulf %141, %103 : vector<2x32xf32>
    %145 = arith.mulf %140, %143 : vector<2x32xf32>
    %146 = arith.addf %144, %145 : vector<2x32xf32>
    %147 = math.tanh %146 : vector<2x32xf32>
    %148 = arith.mulf %142, %147 : vector<2x32xf32>
    %149 = arith.select %107, %148, %102 : vector<2x32xi1>, vector<2x32xf32>
    %150 = arith.select %107, %146, %103 : vector<2x32xi1>, vector<2x32xf32>
    %cst_28 = arith.constant 0.000000e+00 : f32
    %151 = vector.broadcast %cst_28 : f32 to vector<2x32xf32>
    %152 = arith.select %107, %149, %151 : vector<2x32xi1>, vector<2x32xf32>
    %c4 = arith.constant 4 : index
    %c0_29 = arith.constant 0 : index
    %153 = vector.load %arg13[%c4, %c0_29] : memref<16x32xf32, #tpu.memory_space<vmem>>, vector<2x32xf32>
    tpu.vector_store %arg13[%c4, %c0_29], %152 {strides = array<i32>} : memref<16x32xf32, #tpu.memory_space<vmem>>, vector<2x32xf32>,
    %154 = vector.extract_strided_slice %4 {offsets = [6, 0], sizes = [2, 32], strides = [1, 1]} : vector<16x32xi1> to vector<2x32xi1>
    %155 = vector.extract_strided_slice %10 {offsets = [6, 0], sizes = [2, 128], strides = [1, 1]} : vector<16x128xf32> to vector<2x128xf32>
    %156 = arith.addf %155, %130 : vector<2x128xf32>
    %157 = arith.negf %156 : vector<2x128xf32>
    %158 = math.exp %157 : vector<2x128xf32>
    %cst_30 = arith.constant 1.000000e+00 : f32
    %159 = vector.broadcast %cst_30 : f32 to vector<2x128xf32>
    %160 = arith.addf %159, %158 : vector<2x128xf32>
    %161 = arith.divf %159, %160 : vector<2x128xf32>
    %162 = math.tanh %156 : vector<2x128xf32>
    %163 = vector.extract_strided_slice %161 {offsets = [0, 0], sizes = [2, 32], strides = [1, 1]} : vector<2x128xf32> to vector<2x32xf32>
    %164 = vector.extract_strided_slice %161 {offsets = [0, 32], sizes = [2, 32], strides = [1, 1]} : vector<2x128xf32> to vector<2x32xf32>
    %165 = vector.extract_strided_slice %161 {offsets = [0, 96], sizes = [2, 32], strides = [1, 1]} : vector<2x128xf32> to vector<2x32xf32>
    %166 = vector.extract_strided_slice %162 {offsets = [0, 64], sizes = [2, 32], strides = [1, 1]} : vector<2x128xf32> to vector<2x32xf32>
    %167 = arith.mulf %164, %126 : vector<2x32xf32>
    %168 = arith.mulf %163, %166 : vector<2x32xf32>
    %169 = arith.addf %167, %168 : vector<2x32xf32>
    %170 = math.tanh %169 : vector<2x32xf32>
    %171 = arith.mulf %165, %170 : vector<2x32xf32>
    %172 = arith.select %154, %171, %125 : vector<2x32xi1>, vector<2x32xf32>
    %173 = arith.select %154, %169, %126 : vector<2x32xi1>, vector<2x32xf32>
    %174 = tpu.concatenate %172, %149 in 1 : vector<2x32xf32>, vector<2x32xf32> -> vector<2x64xf32>
    %175 = arith.truncf %174 : vector<2x64xf32> to vector<2x64xbf16>
    %cst_31 = arith.constant dense<0.000000e+00> : vector<2x256xf32>
    %176 = tpu.matmul %175, %0, %cst_31 {dimension_numbers = #tpu.dot_dimension_numbers<[1], [0], [0], [1], [0, 0, 1, 1], [], []>} : vector<2x64xbf16>, vector<64x256xbf16>, vector<2x256xf32> -> vector<2x256xf32>
    %177 = vector.extract_strided_slice %176 {offsets = [0, 0], sizes = [2, 128], strides = [1, 1]} : vector<2x256xf32> to vector<2x128xf32>
    %178 = vector.extract_strided_slice %176 {offsets = [0, 128], sizes = [2, 128], strides = [1, 1]} : vector<2x256xf32> to vector<2x128xf32>
    %179 = vector.broadcast %1 : vector<1x128xf32> to vector<2x128xf32>
    %180 = arith.addf %178, %179 : vector<2x128xf32>
    %181 = arith.negf %180 : vector<2x128xf32>
    %182 = math.exp %181 : vector<2x128xf32>
    %cst_32 = arith.constant 1.000000e+00 : f32
    %183 = vector.broadcast %cst_32 : f32 to vector<2x128xf32>
    %184 = arith.addf %183, %182 : vector<2x128xf32>
    %185 = arith.divf %183, %184 : vector<2x128xf32>
    %186 = math.tanh %180 : vector<2x128xf32>
    %187 = vector.extract_strided_slice %185 {offsets = [0, 0], sizes = [2, 32], strides = [1, 1]} : vector<2x128xf32> to vector<2x32xf32>
    %188 = vector.extract_strided_slice %185 {offsets = [0, 32], sizes = [2, 32], strides = [1, 1]} : vector<2x128xf32> to vector<2x32xf32>
    %189 = vector.extract_strided_slice %185 {offsets = [0, 96], sizes = [2, 32], strides = [1, 1]} : vector<2x128xf32> to vector<2x32xf32>
    %190 = vector.extract_strided_slice %186 {offsets = [0, 64], sizes = [2, 32], strides = [1, 1]} : vector<2x128xf32> to vector<2x32xf32>
    %191 = arith.mulf %188, %150 : vector<2x32xf32>
    %192 = arith.mulf %187, %190 : vector<2x32xf32>
    %193 = arith.addf %191, %192 : vector<2x32xf32>
    %194 = math.tanh %193 : vector<2x32xf32>
    %195 = arith.mulf %189, %194 : vector<2x32xf32>
    %196 = arith.select %154, %195, %149 : vector<2x32xi1>, vector<2x32xf32>
    %197 = arith.select %154, %193, %150 : vector<2x32xi1>, vector<2x32xf32>
    %cst_33 = arith.constant 0.000000e+00 : f32
    %198 = vector.broadcast %cst_33 : f32 to vector<2x32xf32>
    %199 = arith.select %154, %196, %198 : vector<2x32xi1>, vector<2x32xf32>
    %c6 = arith.constant 6 : index
    %c0_34 = arith.constant 0 : index
    %200 = vector.load %arg13[%c6, %c0_34] : memref<16x32xf32, #tpu.memory_space<vmem>>, vector<2x32xf32>
    tpu.vector_store %arg13[%c6, %c0_34], %199 {strides = array<i32>} : memref<16x32xf32, #tpu.memory_space<vmem>>, vector<2x32xf32>,
    %201 = vector.extract_strided_slice %4 {offsets = [8, 0], sizes = [2, 32], strides = [1, 1]} : vector<16x32xi1> to vector<2x32xi1>
    %202 = vector.extract_strided_slice %10 {offsets = [8, 0], sizes = [2, 128], strides = [1, 1]} : vector<16x128xf32> to vector<2x128xf32>
    %203 = arith.addf %202, %177 : vector<2x128xf32>
    %204 = arith.negf %203 : vector<2x128xf32>
    %205 = math.exp %204 : vector<2x128xf32>
    %cst_35 = arith.constant 1.000000e+00 : f32
    %206 = vector.broadcast %cst_35 : f32 to vector<2x128xf32>
    %207 = arith.addf %206, %205 : vector<2x128xf32>
    %208 = arith.divf %206, %207 : vector<2x128xf32>
    %209 = math.tanh %203 : vector<2x128xf32>
    %210 = vector.extract_strided_slice %208 {offsets = [0, 0], sizes = [2, 32], strides = [1, 1]} : vector<2x128xf32> to vector<2x32xf32>
    %211 = vector.extract_strided_slice %208 {offsets = [0, 32], sizes = [2, 32], strides = [1, 1]} : vector<2x128xf32> to vector<2x32xf32>
    %212 = vector.extract_strided_slice %208 {offsets = [0, 96], sizes = [2, 32], strides = [1, 1]} : vector<2x128xf32> to vector<2x32xf32>
    %213 = vector.extract_strided_slice %209 {offsets = [0, 64], sizes = [2, 32], strides = [1, 1]} : vector<2x128xf32> to vector<2x32xf32>
    %214 = arith.mulf %211, %173 : vector<2x32xf32>
    %215 = arith.mulf %210, %213 : vector<2x32xf32>
    %216 = arith.addf %214, %215 : vector<2x32xf32>
    %217 = math.tanh %216 : vector<2x32xf32>
    %218 = arith.mulf %212, %217 : vector<2x32xf32>
    %219 = arith.select %201, %218, %172 : vector<2x32xi1>, vector<2x32xf32>
    %220 = arith.select %201, %216, %173 : vector<2x32xi1>, vector<2x32xf32>
    %221 = tpu.concatenate %219, %196 in 1 : vector<2x32xf32>, vector<2x32xf32> -> vector<2x64xf32>
    %222 = arith.truncf %221 : vector<2x64xf32> to vector<2x64xbf16>
    %cst_36 = arith.constant dense<0.000000e+00> : vector<2x256xf32>
    %223 = tpu.matmul %222, %0, %cst_36 {dimension_numbers = #tpu.dot_dimension_numbers<[1], [0], [0], [1], [0, 0, 1, 1], [], []>} : vector<2x64xbf16>, vector<64x256xbf16>, vector<2x256xf32> -> vector<2x256xf32>
    %224 = vector.extract_strided_slice %223 {offsets = [0, 0], sizes = [2, 128], strides = [1, 1]} : vector<2x256xf32> to vector<2x128xf32>
    %225 = vector.extract_strided_slice %223 {offsets = [0, 128], sizes = [2, 128], strides = [1, 1]} : vector<2x256xf32> to vector<2x128xf32>
    %226 = vector.broadcast %1 : vector<1x128xf32> to vector<2x128xf32>
    %227 = arith.addf %225, %226 : vector<2x128xf32>
    %228 = arith.negf %227 : vector<2x128xf32>
    %229 = math.exp %228 : vector<2x128xf32>
    %cst_37 = arith.constant 1.000000e+00 : f32
    %230 = vector.broadcast %cst_37 : f32 to vector<2x128xf32>
    %231 = arith.addf %230, %229 : vector<2x128xf32>
    %232 = arith.divf %230, %231 : vector<2x128xf32>
    %233 = math.tanh %227 : vector<2x128xf32>
    %234 = vector.extract_strided_slice %232 {offsets = [0, 0], sizes = [2, 32], strides = [1, 1]} : vector<2x128xf32> to vector<2x32xf32>
    %235 = vector.extract_strided_slice %232 {offsets = [0, 32], sizes = [2, 32], strides = [1, 1]} : vector<2x128xf32> to vector<2x32xf32>
    %236 = vector.extract_strided_slice %232 {offsets = [0, 96], sizes = [2, 32], strides = [1, 1]} : vector<2x128xf32> to vector<2x32xf32>
    %237 = vector.extract_strided_slice %233 {offsets = [0, 64], sizes = [2, 32], strides = [1, 1]} : vector<2x128xf32> to vector<2x32xf32>
    %238 = arith.mulf %235, %197 : vector<2x32xf32>
    %239 = arith.mulf %234, %237 : vector<2x32xf32>
    %240 = arith.addf %238, %239 : vector<2x32xf32>
    %241 = math.tanh %240 : vector<2x32xf32>
    %242 = arith.mulf %236, %241 : vector<2x32xf32>
    %243 = arith.select %201, %242, %196 : vector<2x32xi1>, vector<2x32xf32>
    %244 = arith.select %201, %240, %197 : vector<2x32xi1>, vector<2x32xf32>
    %cst_38 = arith.constant 0.000000e+00 : f32
    %245 = vector.broadcast %cst_38 : f32 to vector<2x32xf32>
    %246 = arith.select %201, %243, %245 : vector<2x32xi1>, vector<2x32xf32>
    %c8 = arith.constant 8 : index
    %c0_39 = arith.constant 0 : index
    %247 = vector.load %arg13[%c8, %c0_39] : memref<16x32xf32, #tpu.memory_space<vmem>>, vector<2x32xf32>
    tpu.vector_store %arg13[%c8, %c0_39], %246 {strides = array<i32>} : memref<16x32xf32, #tpu.memory_space<vmem>>, vector<2x32xf32>,
    %248 = vector.extract_strided_slice %4 {offsets = [10, 0], sizes = [2, 32], strides = [1, 1]} : vector<16x32xi1> to vector<2x32xi1>
    %249 = vector.extract_strided_slice %10 {offsets = [10, 0], sizes = [2, 128], strides = [1, 1]} : vector<16x128xf32> to vector<2x128xf32>
    %250 = arith.addf %249, %224 : vector<2x128xf32>
    %251 = arith.negf %250 : vector<2x128xf32>
    %252 = math.exp %251 : vector<2x128xf32>
    %cst_40 = arith.constant 1.000000e+00 : f32
    %253 = vector.broadcast %cst_40 : f32 to vector<2x128xf32>
    %254 = arith.addf %253, %252 : vector<2x128xf32>
    %255 = arith.divf %253, %254 : vector<2x128xf32>
    %256 = math.tanh %250 : vector<2x128xf32>
    %257 = vector.extract_strided_slice %255 {offsets = [0, 0], sizes = [2, 32], strides = [1, 1]} : vector<2x128xf32> to vector<2x32xf32>
    %258 = vector.extract_strided_slice %255 {offsets = [0, 32], sizes = [2, 32], strides = [1, 1]} : vector<2x128xf32> to vector<2x32xf32>
    %259 = vector.extract_strided_slice %255 {offsets = [0, 96], sizes = [2, 32], strides = [1, 1]} : vector<2x128xf32> to vector<2x32xf32>
    %260 = vector.extract_strided_slice %256 {offsets = [0, 64], sizes = [2, 32], strides = [1, 1]} : vector<2x128xf32> to vector<2x32xf32>
    %261 = arith.mulf %258, %220 : vector<2x32xf32>
    %262 = arith.mulf %257, %260 : vector<2x32xf32>
    %263 = arith.addf %261, %262 : vector<2x32xf32>
    %264 = math.tanh %263 : vector<2x32xf32>
    %265 = arith.mulf %259, %264 : vector<2x32xf32>
    %266 = arith.select %248, %265, %219 : vector<2x32xi1>, vector<2x32xf32>
    %267 = arith.select %248, %263, %220 : vector<2x32xi1>, vector<2x32xf32>
    %268 = tpu.concatenate %266, %243 in 1 : vector<2x32xf32>, vector<2x32xf32> -> vector<2x64xf32>
    %269 = arith.truncf %268 : vector<2x64xf32> to vector<2x64xbf16>
    %cst_41 = arith.constant dense<0.000000e+00> : vector<2x256xf32>
    %270 = tpu.matmul %269, %0, %cst_41 {dimension_numbers = #tpu.dot_dimension_numbers<[1], [0], [0], [1], [0, 0, 1, 1], [], []>} : vector<2x64xbf16>, vector<64x256xbf16>, vector<2x256xf32> -> vector<2x256xf32>
    %271 = vector.extract_strided_slice %270 {offsets = [0, 0], sizes = [2, 128], strides = [1, 1]} : vector<2x256xf32> to vector<2x128xf32>
    %272 = vector.extract_strided_slice %270 {offsets = [0, 128], sizes = [2, 128], strides = [1, 1]} : vector<2x256xf32> to vector<2x128xf32>
    %273 = vector.broadcast %1 : vector<1x128xf32> to vector<2x128xf32>
    %274 = arith.addf %272, %273 : vector<2x128xf32>
    %275 = arith.negf %274 : vector<2x128xf32>
    %276 = math.exp %275 : vector<2x128xf32>
    %cst_42 = arith.constant 1.000000e+00 : f32
    %277 = vector.broadcast %cst_42 : f32 to vector<2x128xf32>
    %278 = arith.addf %277, %276 : vector<2x128xf32>
    %279 = arith.divf %277, %278 : vector<2x128xf32>
    %280 = math.tanh %274 : vector<2x128xf32>
    %281 = vector.extract_strided_slice %279 {offsets = [0, 0], sizes = [2, 32], strides = [1, 1]} : vector<2x128xf32> to vector<2x32xf32>
    %282 = vector.extract_strided_slice %279 {offsets = [0, 32], sizes = [2, 32], strides = [1, 1]} : vector<2x128xf32> to vector<2x32xf32>
    %283 = vector.extract_strided_slice %279 {offsets = [0, 96], sizes = [2, 32], strides = [1, 1]} : vector<2x128xf32> to vector<2x32xf32>
    %284 = vector.extract_strided_slice %280 {offsets = [0, 64], sizes = [2, 32], strides = [1, 1]} : vector<2x128xf32> to vector<2x32xf32>
    %285 = arith.mulf %282, %244 : vector<2x32xf32>
    %286 = arith.mulf %281, %284 : vector<2x32xf32>
    %287 = arith.addf %285, %286 : vector<2x32xf32>
    %288 = math.tanh %287 : vector<2x32xf32>
    %289 = arith.mulf %283, %288 : vector<2x32xf32>
    %290 = arith.select %248, %289, %243 : vector<2x32xi1>, vector<2x32xf32>
    %291 = arith.select %248, %287, %244 : vector<2x32xi1>, vector<2x32xf32>
    %cst_43 = arith.constant 0.000000e+00 : f32
    %292 = vector.broadcast %cst_43 : f32 to vector<2x32xf32>
    %293 = arith.select %248, %290, %292 : vector<2x32xi1>, vector<2x32xf32>
    %c10 = arith.constant 10 : index
    %c0_44 = arith.constant 0 : index
    %294 = vector.load %arg13[%c10, %c0_44] : memref<16x32xf32, #tpu.memory_space<vmem>>, vector<2x32xf32>
    tpu.vector_store %arg13[%c10, %c0_44], %293 {strides = array<i32>} : memref<16x32xf32, #tpu.memory_space<vmem>>, vector<2x32xf32>,
    %295 = vector.extract_strided_slice %4 {offsets = [12, 0], sizes = [2, 32], strides = [1, 1]} : vector<16x32xi1> to vector<2x32xi1>
    %296 = vector.extract_strided_slice %10 {offsets = [12, 0], sizes = [2, 128], strides = [1, 1]} : vector<16x128xf32> to vector<2x128xf32>
    %297 = arith.addf %296, %271 : vector<2x128xf32>
    %298 = arith.negf %297 : vector<2x128xf32>
    %299 = math.exp %298 : vector<2x128xf32>
    %cst_45 = arith.constant 1.000000e+00 : f32
    %300 = vector.broadcast %cst_45 : f32 to vector<2x128xf32>
    %301 = arith.addf %300, %299 : vector<2x128xf32>
    %302 = arith.divf %300, %301 : vector<2x128xf32>
    %303 = math.tanh %297 : vector<2x128xf32>
    %304 = vector.extract_strided_slice %302 {offsets = [0, 0], sizes = [2, 32], strides = [1, 1]} : vector<2x128xf32> to vector<2x32xf32>
    %305 = vector.extract_strided_slice %302 {offsets = [0, 32], sizes = [2, 32], strides = [1, 1]} : vector<2x128xf32> to vector<2x32xf32>
    %306 = vector.extract_strided_slice %302 {offsets = [0, 96], sizes = [2, 32], strides = [1, 1]} : vector<2x128xf32> to vector<2x32xf32>
    %307 = vector.extract_strided_slice %303 {offsets = [0, 64], sizes = [2, 32], strides = [1, 1]} : vector<2x128xf32> to vector<2x32xf32>
    %308 = arith.mulf %305, %267 : vector<2x32xf32>
    %309 = arith.mulf %304, %307 : vector<2x32xf32>
    %310 = arith.addf %308, %309 : vector<2x32xf32>
    %311 = math.tanh %310 : vector<2x32xf32>
    %312 = arith.mulf %306, %311 : vector<2x32xf32>
    %313 = arith.select %295, %312, %266 : vector<2x32xi1>, vector<2x32xf32>
    %314 = arith.select %295, %310, %267 : vector<2x32xi1>, vector<2x32xf32>
    %315 = tpu.concatenate %313, %290 in 1 : vector<2x32xf32>, vector<2x32xf32> -> vector<2x64xf32>
    %316 = arith.truncf %315 : vector<2x64xf32> to vector<2x64xbf16>
    %cst_46 = arith.constant dense<0.000000e+00> : vector<2x256xf32>
    %317 = tpu.matmul %316, %0, %cst_46 {dimension_numbers = #tpu.dot_dimension_numbers<[1], [0], [0], [1], [0, 0, 1, 1], [], []>} : vector<2x64xbf16>, vector<64x256xbf16>, vector<2x256xf32> -> vector<2x256xf32>
    %318 = vector.extract_strided_slice %317 {offsets = [0, 0], sizes = [2, 128], strides = [1, 1]} : vector<2x256xf32> to vector<2x128xf32>
    %319 = vector.extract_strided_slice %317 {offsets = [0, 128], sizes = [2, 128], strides = [1, 1]} : vector<2x256xf32> to vector<2x128xf32>
    %320 = vector.broadcast %1 : vector<1x128xf32> to vector<2x128xf32>
    %321 = arith.addf %319, %320 : vector<2x128xf32>
    %322 = arith.negf %321 : vector<2x128xf32>
    %323 = math.exp %322 : vector<2x128xf32>
    %cst_47 = arith.constant 1.000000e+00 : f32
    %324 = vector.broadcast %cst_47 : f32 to vector<2x128xf32>
    %325 = arith.addf %324, %323 : vector<2x128xf32>
    %326 = arith.divf %324, %325 : vector<2x128xf32>
    %327 = math.tanh %321 : vector<2x128xf32>
    %328 = vector.extract_strided_slice %326 {offsets = [0, 0], sizes = [2, 32], strides = [1, 1]} : vector<2x128xf32> to vector<2x32xf32>
    %329 = vector.extract_strided_slice %326 {offsets = [0, 32], sizes = [2, 32], strides = [1, 1]} : vector<2x128xf32> to vector<2x32xf32>
    %330 = vector.extract_strided_slice %326 {offsets = [0, 96], sizes = [2, 32], strides = [1, 1]} : vector<2x128xf32> to vector<2x32xf32>
    %331 = vector.extract_strided_slice %327 {offsets = [0, 64], sizes = [2, 32], strides = [1, 1]} : vector<2x128xf32> to vector<2x32xf32>
    %332 = arith.mulf %329, %291 : vector<2x32xf32>
    %333 = arith.mulf %328, %331 : vector<2x32xf32>
    %334 = arith.addf %332, %333 : vector<2x32xf32>
    %335 = math.tanh %334 : vector<2x32xf32>
    %336 = arith.mulf %330, %335 : vector<2x32xf32>
    %337 = arith.select %295, %336, %290 : vector<2x32xi1>, vector<2x32xf32>
    %338 = arith.select %295, %334, %291 : vector<2x32xi1>, vector<2x32xf32>
    %cst_48 = arith.constant 0.000000e+00 : f32
    %339 = vector.broadcast %cst_48 : f32 to vector<2x32xf32>
    %340 = arith.select %295, %337, %339 : vector<2x32xi1>, vector<2x32xf32>
    %c12 = arith.constant 12 : index
    %c0_49 = arith.constant 0 : index
    %341 = vector.load %arg13[%c12, %c0_49] : memref<16x32xf32, #tpu.memory_space<vmem>>, vector<2x32xf32>
    tpu.vector_store %arg13[%c12, %c0_49], %340 {strides = array<i32>} : memref<16x32xf32, #tpu.memory_space<vmem>>, vector<2x32xf32>,
    %342 = vector.extract_strided_slice %4 {offsets = [14, 0], sizes = [2, 32], strides = [1, 1]} : vector<16x32xi1> to vector<2x32xi1>
    %343 = vector.extract_strided_slice %10 {offsets = [14, 0], sizes = [2, 128], strides = [1, 1]} : vector<16x128xf32> to vector<2x128xf32>
    %344 = arith.addf %343, %318 : vector<2x128xf32>
    %345 = arith.negf %344 : vector<2x128xf32>
    %346 = math.exp %345 : vector<2x128xf32>
    %cst_50 = arith.constant 1.000000e+00 : f32
    %347 = vector.broadcast %cst_50 : f32 to vector<2x128xf32>
    %348 = arith.addf %347, %346 : vector<2x128xf32>
    %349 = arith.divf %347, %348 : vector<2x128xf32>
    %350 = math.tanh %344 : vector<2x128xf32>
    %351 = vector.extract_strided_slice %349 {offsets = [0, 0], sizes = [2, 32], strides = [1, 1]} : vector<2x128xf32> to vector<2x32xf32>
    %352 = vector.extract_strided_slice %349 {offsets = [0, 32], sizes = [2, 32], strides = [1, 1]} : vector<2x128xf32> to vector<2x32xf32>
    %353 = vector.extract_strided_slice %349 {offsets = [0, 96], sizes = [2, 32], strides = [1, 1]} : vector<2x128xf32> to vector<2x32xf32>
    %354 = vector.extract_strided_slice %350 {offsets = [0, 64], sizes = [2, 32], strides = [1, 1]} : vector<2x128xf32> to vector<2x32xf32>
    %355 = arith.mulf %352, %314 : vector<2x32xf32>
    %356 = arith.mulf %351, %354 : vector<2x32xf32>
    %357 = arith.addf %355, %356 : vector<2x32xf32>
    %358 = math.tanh %357 : vector<2x32xf32>
    %359 = arith.mulf %353, %358 : vector<2x32xf32>
    %360 = arith.select %342, %359, %313 : vector<2x32xi1>, vector<2x32xf32>
    %361 = arith.select %342, %357, %314 : vector<2x32xi1>, vector<2x32xf32>
    %362 = tpu.concatenate %360, %337 in 1 : vector<2x32xf32>, vector<2x32xf32> -> vector<2x64xf32>
    %363 = arith.truncf %362 : vector<2x64xf32> to vector<2x64xbf16>
    %cst_51 = arith.constant dense<0.000000e+00> : vector<2x256xf32>
    %364 = tpu.matmul %363, %0, %cst_51 {dimension_numbers = #tpu.dot_dimension_numbers<[1], [0], [0], [1], [0, 0, 1, 1], [], []>} : vector<2x64xbf16>, vector<64x256xbf16>, vector<2x256xf32> -> vector<2x256xf32>
    %365 = vector.extract_strided_slice %364 {offsets = [0, 128], sizes = [2, 128], strides = [1, 1]} : vector<2x256xf32> to vector<2x128xf32>
    %366 = vector.broadcast %1 : vector<1x128xf32> to vector<2x128xf32>
    %367 = arith.addf %365, %366 : vector<2x128xf32>
    %368 = arith.negf %367 : vector<2x128xf32>
    %369 = math.exp %368 : vector<2x128xf32>
    %cst_52 = arith.constant 1.000000e+00 : f32
    %370 = vector.broadcast %cst_52 : f32 to vector<2x128xf32>
    %371 = arith.addf %370, %369 : vector<2x128xf32>
    %372 = arith.divf %370, %371 : vector<2x128xf32>
    %373 = math.tanh %367 : vector<2x128xf32>
    %374 = vector.extract_strided_slice %372 {offsets = [0, 0], sizes = [2, 32], strides = [1, 1]} : vector<2x128xf32> to vector<2x32xf32>
    %375 = vector.extract_strided_slice %372 {offsets = [0, 32], sizes = [2, 32], strides = [1, 1]} : vector<2x128xf32> to vector<2x32xf32>
    %376 = vector.extract_strided_slice %372 {offsets = [0, 96], sizes = [2, 32], strides = [1, 1]} : vector<2x128xf32> to vector<2x32xf32>
    %377 = vector.extract_strided_slice %373 {offsets = [0, 64], sizes = [2, 32], strides = [1, 1]} : vector<2x128xf32> to vector<2x32xf32>
    %378 = arith.mulf %375, %338 : vector<2x32xf32>
    %379 = arith.mulf %374, %377 : vector<2x32xf32>
    %380 = arith.addf %378, %379 : vector<2x32xf32>
    %381 = math.tanh %380 : vector<2x32xf32>
    %382 = arith.mulf %376, %381 : vector<2x32xf32>
    %383 = arith.select %342, %382, %337 : vector<2x32xi1>, vector<2x32xf32>
    %384 = arith.select %342, %380, %338 : vector<2x32xi1>, vector<2x32xf32>
    %cst_53 = arith.constant 0.000000e+00 : f32
    %385 = vector.broadcast %cst_53 : f32 to vector<2x32xf32>
    %386 = arith.select %342, %383, %385 : vector<2x32xi1>, vector<2x32xf32>
    %c14 = arith.constant 14 : index
    %c0_54 = arith.constant 0 : index
    %387 = vector.load %arg13[%c14, %c0_54] : memref<16x32xf32, #tpu.memory_space<vmem>>, vector<2x32xf32>
    tpu.vector_store %arg13[%c14, %c0_54], %386 {strides = array<i32>} : memref<16x32xf32, #tpu.memory_space<vmem>>, vector<2x32xf32>,
    %c0_55 = arith.constant 0 : index
    %c0_56 = arith.constant 0 : index
    %c0_57 = arith.constant 0 : index
    %388 = vector.load %arg11[%c0_55, %c0_56, %c0_57] : memref<2x2x32xf32, #tpu.memory_space<vmem>>, vector<1x2x32xf32>
    %389 = vector.shape_cast %388 : vector<1x2x32xf32> to vector<2x32xf32>
    %390 = vector.shape_cast %360 : vector<2x32xf32> to vector<1x2x32xf32>
    tpu.vector_store %arg11[%c0_55, %c0_56, %c0_57], %390 {strides = array<i32>} : memref<2x2x32xf32, #tpu.memory_space<vmem>>, vector<1x2x32xf32>,
    %c1 = arith.constant 1 : index
    %c0_58 = arith.constant 0 : index
    %c0_59 = arith.constant 0 : index
    %391 = vector.load %arg11[%c1, %c0_58, %c0_59] : memref<2x2x32xf32, #tpu.memory_space<vmem>>, vector<1x2x32xf32>
    %392 = vector.shape_cast %391 : vector<1x2x32xf32> to vector<2x32xf32>
    %393 = vector.shape_cast %383 : vector<2x32xf32> to vector<1x2x32xf32>
    tpu.vector_store %arg11[%c1, %c0_58, %c0_59], %393 {strides = array<i32>} : memref<2x2x32xf32, #tpu.memory_space<vmem>>, vector<1x2x32xf32>,
    %c0_60 = arith.constant 0 : index
    %c0_61 = arith.constant 0 : index
    %c0_62 = arith.constant 0 : index
    %394 = vector.load %arg12[%c0_60, %c0_61, %c0_62] : memref<2x2x32xf32, #tpu.memory_space<vmem>>, vector<1x2x32xf32>
    %395 = vector.shape_cast %394 : vector<1x2x32xf32> to vector<2x32xf32>
    %396 = vector.shape_cast %361 : vector<2x32xf32> to vector<1x2x32xf32>
    tpu.vector_store %arg12[%c0_60, %c0_61, %c0_62], %396 {strides = array<i32>} : memref<2x2x32xf32, #tpu.memory_space<vmem>>, vector<1x2x32xf32>,
    %c1_63 = arith.constant 1 : index
    %c0_64 = arith.constant 0 : index
    %c0_65 = arith.constant 0 : index
    %397 = vector.load %arg12[%c1_63, %c0_64, %c0_65] : memref<2x2x32xf32, #tpu.memory_space<vmem>>, vector<1x2x32xf32>
    %398 = vector.shape_cast %397 : vector<1x2x32xf32> to vector<2x32xf32>
    %399 = vector.shape_cast %384 : vector<2x32xf32> to vector<1x2x32xf32>
    tpu.vector_store %arg12[%c1_63, %c0_64, %c0_65], %399 {strides = array<i32>} : memref<2x2x32xf32, #tpu.memory_space<vmem>>, vector<1x2x32xf32>,
    %c0_66 = arith.constant 0 : index
    %c0_67 = arith.constant 0 : index
    %400 = vector.load %arg13[%c0_66, %c0_67] : memref<16x32xf32, #tpu.memory_space<vmem>>, vector<16x32xf32>
    %401 = arith.truncf %400 : vector<16x32xf32> to vector<16x32xbf16>
    %c0_68 = arith.constant 0 : index
    %c0_69 = arith.constant 0 : index
    %402 = vector.load %arg6[%c0_68, %c0_69] : memref<32x32xbf16, #tpu.memory_space<vmem>>, vector<32x32xbf16>
    %cst_70 = arith.constant dense<0.000000e+00> : vector<16x32xf32>
    %403 = tpu.matmul %401, %402, %cst_70 {dimension_numbers = #tpu.dot_dimension_numbers<[1], [0], [0], [1], [0, 0, 1, 1], [], []>} : vector<16x32xbf16>, vector<32x32xbf16>, vector<16x32xf32> -> vector<16x32xf32>
    %c0_71 = arith.constant 0 : index
    %c0_72 = arith.constant 0 : index
    %404 = vector.load %arg7[%c0_71, %c0_72] : memref<1x32xf32, #tpu.memory_space<vmem>>, vector<1x32xf32>
    %405 = vector.broadcast %404 : vector<1x32xf32> to vector<16x32xf32>
    %406 = arith.addf %403, %405 : vector<16x32xf32>
    %407 = math.tanh %406 : vector<16x32xf32>
    %408 = arith.truncf %407 : vector<16x32xf32> to vector<16x32xbf16>
    %c0_73 = arith.constant 0 : index
    %c0_74 = arith.constant 0 : index
    %409 = vector.load %arg8[%c0_73, %c0_74] : memref<32x128xbf16, #tpu.memory_space<vmem>>, vector<32x128xbf16>
    %cst_75 = arith.constant dense<0.000000e+00> : vector<16x128xf32>
    %410 = tpu.matmul %408, %409, %cst_75 {dimension_numbers = #tpu.dot_dimension_numbers<[1], [0], [0], [1], [0, 0, 1, 1], [], []>} : vector<16x32xbf16>, vector<32x128xbf16>, vector<16x128xf32> -> vector<16x128xf32>
    %c0_76 = arith.constant 0 : index
    %c0_77 = arith.constant 0 : index
    %411 = vector.load %arg9[%c0_76, %c0_77] : memref<1x128xf32, #tpu.memory_space<vmem>>, vector<1x128xf32>
    %412 = vector.broadcast %411 : vector<1x128xf32> to vector<16x128xf32>
    %413 = arith.addf %410, %412 : vector<16x128xf32>
    %c0_78 = arith.constant 0 : index
    %c0_79 = arith.constant 0 : index
    %414 = vector.load %arg10[%c0_78, %c0_79] : memref<16x128xf32, #tpu.memory_space<vmem>>, vector<16x128xf32>
    tpu.vector_store %arg10[%c0_78, %c0_79], %413 {strides = array<i32>} : memref<16x128xf32, #tpu.memory_space<vmem>>, vector<16x128xf32>,
    return
  }
}

</mosaic_0001>

<bundles_post_ra>
// kernel: tpu_custom_call.1
= control target key start
LH: loop header
LB: loop body
LE: loop exit
PB: predicated region body
PF: predicated region fallthrough
CT: control target
= control target key end

     0   :  { %18 = vsyncpa [#allocation4], 0  ;;  %s2698_s0 = inlined_call_operand.hbm [shape: bf16[16,64], index: 0, kind: input, shape index: {}]   ;;  %s2699_s1 = inlined_call_operand.hbm [shape: f32[16,32], index: 1, kind: input, shape index: {}]   ;;  %s2700_s2 = inlined_call_operand.hbm [shape: bf16[64,128], index: 2, kind: input, shape index: {}]   ;;  %s2701_s3 = inlined_call_operand.vmem [shape: f32[1,128], index: 3, kind: input, shape index: {}]   ;;  %s2702_s4 = inlined_call_operand.hbm [shape: bf16[64,256], index: 4, kind: input, shape index: {}]   ;;  %s2703_s5 = inlined_call_operand.vmem [shape: f32[1,128], index: 5, kind: input, shape index: {}]   ;;  %s2704_s6 = inlined_call_operand.hbm [shape: bf16[32,32], index: 6, kind: input, shape index: {}]   ;;  %s2705_s7 = inlined_call_operand.vmem [shape: f32[1,32], index: 7, kind: input, shape index: {}]   ;;  %s2706_s8 = inlined_call_operand.hbm [shape: bf16[32,128], index: 8, kind: input, shape index: {}]   ;;  %s2707_s9 = inlined_call_operand.vmem [shape: f32[1,128], index: 9, kind: input, shape index: {}]   ;;  %s2708_s10 = inlined_call_operand.hbm [shape: f32[16,128], index: 10, kind: output, shape index: {0}]   ;;  %s2709_s11 = inlined_call_operand.hbm [shape: f32[2,2,32], index: 11, kind: output, shape index: {1}]   ;;  %s2710_s12 = inlined_call_operand.hbm [shape: f32[2,2,32], index: 12, kind: output, shape index: {2}]  }
   0x1   :  { %19 = vsyncpa [#allocation7], 0 }
   0x2   :  { %20 = vsyncpa [#allocation10], 0 }
   0x3   :  { %21 = vsyncpa [#allocation13], 0 }
   0x4   :  { %22 = vsyncpa [#allocation5], 0 }
   0x5   :  { %23 = vsyncpa [#allocation16], 0  ;;  %s2064_s21 = smov [#allocation6]  }
   0x6   :  { %s41_s22 = sshll.u32 %s2064_s21, 4  ;;  %s42_s22 = int_to_ptr.vmem [resolvable:$true] %s41_s22 }
   0x7   :  { %s1880_s23 = scalar_lea.vmem %s42_s22, 256  ;;  %p1885_p1 = scmp.lt.s32.totalorder %s42_s22, %s42_s22 }
   0x8   :  { %p1881_p0 = scmp.ne.s32.totalorder %s42_s22, %s1880_s23  ;;  %p1886_p2 = scmp.lt.s32.totalorder %s1880_s23, %s1880_s23 }
   0xa   :  { %p1887_p3 = por %p1886_p2, %p1885_p1 }
   0xc   :  { %p1888_p4 = pnand %p1887_p3, %p1881_p0 }
   0xe   :  { %1891 = shalt.err (!%p1888_p4)
}
   0xf   :  { %s2065_s24 = smov 128   ;;  %s2066_s25 = smov 8  }
  0x10   :  { %47 = dma.hbm_to_vmem [thread:$0]  %s2699_s1, 256, %s42_s22, [#allocation7], %s2065_s24, %s2065_s24, %s2066_s25  }
  0x11   :  { %s2067_s28 = smov [#allocation9]   ;;  %s2068_s30 = smov [#allocation3]  }
  0x12   :  { %s67_s29 = sshll.u32 %s2067_s28, 4  ;;  %s29_s13 = sshll.u32 %s2068_s30, 4  ;;  %s68_s29 = int_to_ptr.vmem [resolvable:$true] %s67_s29  ;;  %s30_s13 = int_to_ptr.vmem [resolvable:$true] %s29_s13 }
  0x13   :  { %s1900_s14 = scalar_lea.vmem %s68_s29, 1024  ;;  %p1905_p6 = scmp.lt.s32.totalorder %s68_s29, %s68_s29 }
  0x14   :  { %p1901_p5 = scmp.ne.s32.totalorder %s68_s29, %s1900_s14  ;;  %p1906_p7 = scmp.lt.s32.totalorder %s1900_s14, %s1900_s14 }
  0x16   :  { %p1907_p8 = por %p1906_p7, %p1905_p6 }
  0x18   :  { %p1908_p9 = pnand %p1907_p8, %p1901_p5 }
  0x1a   :  { %1911 = shalt.err (!%p1908_p9)
}
  0x1b   :  { %73 = dma.hbm_to_vmem [thread:$0]  %s2702_s4, 1024, %s68_s29, [#allocation10], %s2065_s24, %s2065_s24, %s2066_s25  }
  0x1c   :  { %s1920_s1 = scalar_lea.vmem %s30_s13, 128  ;;  %p1925_p11 = scmp.lt.s32.totalorder %s30_s13, %s30_s13 }
  0x1d   :  { %p1921_p10 = scmp.ne.s32.totalorder %s30_s13, %s1920_s1  ;;  %p1926_p12 = scmp.lt.s32.totalorder %s1920_s1, %s1920_s1 }
  0x1f   :  { %p1927_p13 = por %p1926_p12, %p1925_p11 }
  0x21   :  { %p1928_p0 = pnand %p1927_p13, %p1921_p10 }
  0x23   :  { %1931 = shalt.err (!%p1928_p0)
}
  0x24   :  { %s2069_s17 = smov 64   ;;  %s2070_s18 = smov 4  }
  0x25   :  { %35 = dma.hbm_to_vmem [thread:$0]  %s2698_s0, 128, %s30_s13, [#allocation4], %s2069_s17, %s2069_s17, %s2070_s18  }
  0x26   :  { %s2071_s21 = smov [#allocation8]   ;;  %s2072_s4 = smov [#allocation11]  }
  0x27   :  { %s53_s22 = sshll.u32 %s2071_s21, 4  ;;  %s81_s23 = sshll.u32 %s2072_s4, 4  ;;  %s54_s22 = int_to_ptr.vmem [resolvable:$true] %s53_s22  ;;  %s82_s23 = int_to_ptr.vmem [resolvable:$true] %s81_s23 }
  0x28   :  { %s1940_s26 = scalar_lea.vmem %s54_s22, 512  ;;  %p1945_p2 = scmp.lt.s32.totalorder %s54_s22, %s54_s22 }
  0x29   :  { %p1941_p1 = scmp.ne.s32.totalorder %s54_s22, %s1940_s26  ;;  %p1946_p3 = scmp.lt.s32.totalorder %s1940_s26, %s1940_s26 }
  0x2b   :  { %p1947_p4 = por %p1946_p3, %p1945_p2 }
  0x2d   :  { %p1948_p5 = pnand %p1947_p4, %p1941_p1 }
  0x2f   :  { %1951 = shalt.err (!%p1948_p5)
}
  0x30   :  { %59 = dma.hbm_to_vmem [thread:$0]  %s2700_s2, 512, %s54_s22, [#allocation7], %s2069_s17, %s2069_s17, %s2070_s18  }
  0x31   :  { %s1960_s0 = scalar_lea.vmem %s82_s23, 256  ;;  %p1965_p7 = scmp.lt.s32.totalorder %s82_s23, %s82_s23 }
  0x32   :  { %p1961_p6 = scmp.ne.s32.totalorder %s82_s23, %s1960_s0  ;;  %p1966_p8 = scmp.lt.s32.totalorder %s1960_s0, %s1960_s0 }
  0x34   :  { %p1967_p9 = por %p1966_p8, %p1965_p7 }
  0x36   :  { %p1968_p10 = pnand %p1967_p9, %p1961_p6 }
  0x38   :  { %1971 = shalt.err (!%p1968_p10)
}
  0x39   :  { %87 = dma.hbm_to_vmem [thread:$0]  %s2704_s6, 256, %s82_s23, [#allocation10], %s2069_s17, %s2069_s17, %s2070_s18  }
  0x3a   :  { %s2073_s13 = smov [#allocation12]  }
  0x3b   :  { %s95_s14 = sshll.u32 %s2073_s13, 4  ;;  %s96_s14 = int_to_ptr.vmem [resolvable:$true] %s95_s14 }
  0x3c   :  { %s1980_s15 = scalar_lea.vmem %s96_s14, 256  ;;  %p1985_p12 = scmp.lt.s32.totalorder %s96_s14, %s96_s14 }
  0x3d   :  { %p1981_p11 = scmp.ne.s32.totalorder %s96_s14, %s1980_s15  ;;  %p1986_p13 = scmp.lt.s32.totalorder %s1980_s15, %s1980_s15 }
  0x3f   :  { %p1987_p0 = por %p1986_p13, %p1985_p12 }
  0x41   :  { %p1988_p1 = pnand %p1987_p0, %p1981_p11 }
  0x43   :  { %1991 = shalt.err (!%p1988_p1)
}
  0x44   :  { %101 = dma.hbm_to_vmem [thread:$0]  %s2706_s8, 256, %s96_s14, [#allocation13], %s2069_s17, %s2069_s17, %s2070_s18  }
  0x45   :  { %2052 = dma.done.wait [#allocation4], 128  }
  0x46   :  { %2053 = vsyncadd [#allocation4], 4294967168 }
  0x47   :  { %2054 = dma.done.wait [#allocation7], 768  }
  0x48   :  { %2055 = vsyncadd [#allocation7], 4294966528 }
  0x49   :  { %2056 = dma.done.wait [#allocation10], 1280  }
  0x4a   :  { %2057 = vsyncadd [#allocation10], 4294966016 }
  0x4b   :  { %2058 = dma.done.wait [#allocation13], 256  }
  0x4c   :  { %2059 = vsyncadd [#allocation13], 4294967040  ;;  %v2074_v0 = vmov 0.0   ;;  %vm2075_vm0 = vmmov 0   ;;  %v1718_v1 = vld [vmem:[#allocation8 + $0x18] sm:$0xff]   ;;  %v1719_v2 = vld [vmem:[#allocation8 + $0x10] sm:$0xff]  }
  0x4d   :  { %1671 = vmatprep.subr.bf16.mxu0 %v2074_v0  ;;  %1679 = vmatprep.mubr.msk.bf16.mxu0 %vm2075_vm0, %v2074_v0  ;;  %v1720_v3 = vld [vmem:[#allocation8 + $0x8] sm:$0xff]   ;;  %v1721_v4 = vld [vmem:[#allocation8] sm:$0xff]   ;;  %vm182_vm1 = vcmask 523264   ;;  %v1612_v6 = vld [vmem:[%s2701_s3] ss:$0 sm:$0xff]  ;;  %s2076_s3 = smov 32  }
  0x4e   :  { %1672 = vmatpush3.bf16.msra.mxu0 %v1718_v1  ;;  %v1722_v5 = vld [vmem:[#allocation3] sm:$0xff]   ;;  %v2202_v23 = vld [vmem:[#allocation9 + $0x34] ss:$8 sps:$4 sm:$0xff]   ;;  %v2204_v24 = vld [vmem:[#allocation9 + $0x30] ss:$8 sps:$4 sm:$0xff]   ;;  %v2077_v32 = vmov 0  }
  0x4f   :  { %1673 = vmatprep.subr.bf16.mxu0 %v2074_v0  ;;  %v2206_v25 = vld [vmem:[#allocation9 + $0x24] ss:$8 sps:$4 sm:$0xff]   ;;  %316 = vmatprep.subr.bf16.mxu1 %v2202_v23  ;;  %v2211_v26 = vld [vmem:[#allocation9 + $0x20] ss:$8 sps:$4 sm:$0xff]   ;;  %v2215_v27 = vld [vmem:[#allocation9 + $0x14] ss:$8 sps:$4 sm:$0xff]  }
  0x50   :  { %317 = vmatpush1.bf16.msra.mxu1 %v2204_v24  ;;  %v2220_v29 = vld [vmem:[#allocation9 + $0x10] ss:$8 sps:$4 sm:$0xff]   ;;  %v2227_v30 = vld [vmem:[#allocation9 + $0x4] ss:$8 sps:$4 sm:$0xff]   ;;  %v2229_v31 = vld [vmem:[#allocation9] ss:$8 sps:$4 sm:$0xff]   ;;  %340 = vmatprep.mubr.bf16.mxu1 %v2077_v32 }
  0x51   :  { %318 = vmatprep.subr.bf16.mxu1 %v2206_v25  ;;  %s2078_s1 = smov 96   ;;  %v2241_v35 = vld [vmem:[#allocation6] sm:$0xff]  ;;  %vm262_vm3 = vcmask 261120   ;;  %v2263_v41 = vld [vmem:[%s2703_s5] ss:$0 sm:$0xff]  ;;  %vm390_vm4 = vcmask 254976  }
  0x52   :  { %1674 = vmatpush3.bf16.msra.mxu0 %v1719_v2  ;;  %vm134_vm2 = vcmp.ne.f32.partialorder %v2241_v35, 0.0  ;;  %vm537_vm5 = vcmask 257026   ;;  %vm685_vm6 = vcmask 259076   ;;  %vm833_vm7 = vcmask 261126   ;;  %s2079_s22 = smov [#allocation15]  }
  0x53   :  { %1675 = vmatprep.subr.bf16.mxu0 %v2074_v0  ;;  %s1578_s4 = sshll.u32 %s2079_s22, 4  ;;  %s1579_s4 = int_to_ptr.vmem [resolvable:$true] %s1578_s4 }
  0x54   :  { %319 = vmatpush1.bf16.msra.mxu1 %v2211_v26  ;;  %s1992_s23 = scalar_lea.vmem %s1579_s4, 64  ;;  %p1997_p3 = scmp.lt.s32.totalorder %s1579_s4, %s1579_s4 }
  0x55   :  { %320 = vmatprep.subr.bf16.mxu1 %v2215_v27  ;;  %p1993_p2 = scmp.ne.s32.totalorder %s1579_s4, %s1992_s23  ;;  %p1998_p4 = scmp.lt.s32.totalorder %s1992_s23, %s1992_s23 }
  0x56   :  { %1676 = vmatpush3.bf16.msra.mxu0 %v1720_v3 }
  0x57   :  { %1677 = vmatprep.subr.bf16.mxu0 %v2074_v0  ;;  %p1999_p5 = por %p1998_p4, %p1997_p3 }
  0x58   :  { %321 = vmatpush1.bf16.msra.mxu1 %v2220_v29 }
  0x59   :  { %322 = vmatprep.subr.bf16.mxu1 %v2227_v30  ;;  %p2000_p6 = pnand %p1999_p5, %p1993_p2 }
  0x5a   :  { %1678 = vmatpush3.bf16.msra.mxu0 %v1721_v4 }
  0x5b   :  { %459 = vmatprep.subr.bf16.mxu0 %v2202_v23 }
  0x5c   :  { %323 = vmatpush1.bf16.msra.mxu1 %v2229_v31 }
  0x5d   :  { %1680 = vmatmul.mubr.msk.bf16.vlgmr.msra.gmra.mxu0 %vm182_vm1, %v1722_v5  ;;  %606 = vmatprep.subr.bf16.mxu1 %v2202_v23 }
  0x5e   :  { %460 = vmatpush1.bf16.msra.mxu0 %v2204_v24  ;;  %483 = vmatprep.mubr.bf16.mxu0 %v2077_v32 }
  0x5f   :  { %461 = vmatprep.subr.bf16.mxu0 %v2206_v25 }
  0x62   :  { %462 = vmatpush1.bf16.msra.mxu0 %v2211_v26 }
  0x63   :  { %463 = vmatprep.subr.bf16.mxu0 %v2215_v27 }
  0x66   :  { %464 = vmatpush1.bf16.msra.mxu0 %v2220_v29 }
  0x67   :  { %465 = vmatprep.subr.bf16.mxu0 %v2227_v30 }
  0x6a   :  { %466 = vmatpush1.bf16.msra.mxu0 %v2229_v31 }
  0x6b   :  { %754 = vmatprep.subr.bf16.mxu0 %v2202_v23 }
 0x11d   :  { %v220_v7 = vpop.f32.mrf.mxu0 }
 0x11e   :  { %v2194_v8 = vadd.f32 %v1612_v6, %v220_v7 }
 0x11f   :  { %v1681_v9 = vpop.f32.mrf.mxu0 }
 0x120   :  { %1739 = vtanh.f32 %v2194_v8  ;;  %v1619_v14 = vmul.f32 -1.442695, %v2194_v8 }
 0x121   :  { %v223_v10 = vpop.f32.mrf.mxu0 }
 0x122   :  { %v2197_v11 = vadd.f32 %v1612_v6, %v223_v10  ;;  %1741 = vpow2.f32 %v1619_v14 }
 0x123   :  { %v1682_v12 = vpop.f32.mrf.mxu0 }
 0x12d   :  { %v1740_v13 = vpop.eup %1739 }
 0x12e   :  { %237 = vrot.lane.b32.xlu0 %v1740_v13, %s2069_s17 }
 0x12f   :  { %v1742_v15 = vpop.eup %1741 }
 0x130   :  { %v231_v16 = vadd.f32 1.0, %v1742_v15 }
 0x132   :  { %1743 = vrcp.f32 %v231_v16 }
 0x13f   :  { %v1744_v17 = vpop.eup %1743 }
 0x140   :  { %v235_v20 = vmul.f32 0.0, %v1744_v17 }
 0x1a0   :  { %v238_v18 = vpop.permute.xlu0 %237 }
 0x1a1   :  { %v240_v19 = vmul.f32 %v1744_v17, %v238_v18 }
 0x1a3   :  { %242 = vrot.lane.b32.xlu0 %v240_v19, %s2076_s3 }
 0x215   :  { %v243_v21 = vpop.permute.xlu0 %242 }
 0x216   :  { %v245_v22 = vadd.f32 %v243_v21, %v235_v20 }
 0x218   :  { %1745 = vtanh.f32 %v245_v22 }
 0x225   :  { %v1746_v28 = vpop.eup %1745 }
 0x226   :  { %248 = vrot.lane.b32.xlu1 %v1746_v28, %s2069_s17 }
 0x298   :  { %v249_v33 = vpop.permute.xlu1 %248 }
 0x299   :  { %v251_v34 = vmul.f32 %v1744_v17, %v249_v33 }
 0x29b   :  { %253 = vrot.lane.b32.xlu1 %v251_v34, %s2076_s3 }
 0x29f   :  { %258 = vrot.lane.b32.xlu1 %v245_v22, %s2078_s1 }
 0x30d   :  { %v254_v36 = vpop.permute.xlu1 %253 }
 0x30e   :  { %v2246_v37 = vsel %vm134_vm2, %v254_v36, 0.0 }
 0x30f   :  { %v263_v38 = vsel %vm262_vm3, %v2246_v37, 0.0  ;;  %v430_v20 = vrot.slane %v2246_v37, 6 }
 0x310   :  { %v264_v39 = vpack.c.bf16 %v263_v38, %v263_v38 }
 0x311   :  { %v259_v56 = vpop.permute.xlu1 %258 }
 0x312   :  { %1628 = vmatmul.mubr.msk.bf16.vlgmr.msra.gmra.mxu1 %vm182_vm1, %v264_v39  ;;  %v2271_v63 = vsel %vm134_vm2, %v259_v56, 0.0 }
 0x313   :  { %607 = vmatpush1.bf16.msra.mxu1 %v2204_v24  ;;  %630 = vmatprep.mubr.bf16.mxu1 %v2077_v32  ;;  %v404_v1 = vrot.slane %v2271_v63, 6 }
 0x314   :  { %608 = vmatprep.subr.bf16.mxu1 %v2206_v25 }
 0x317   :  { %609 = vmatpush1.bf16.msra.mxu1 %v2211_v26 }
 0x318   :  { %610 = vmatprep.subr.bf16.mxu1 %v2215_v27 }
 0x31b   :  { %611 = vmatpush1.bf16.msra.mxu1 %v2220_v29 }
 0x31c   :  { %612 = vmatprep.subr.bf16.mxu1 %v2227_v30 }
 0x31f   :  { %613 = vmatpush1.bf16.msra.mxu1 %v2229_v31 }
 0x320   :  { %897 = vmatprep.subr.bf16.mxu1 %v2202_v23 }
 0x3d2   :  { %v342_v40 = vpop.f32.mrf.mxu1 }
 0x3d3   :  { %v393_v42 = vrot.slane %v342_v40, 6 }
 0x3d4   :  { %v344_v43 = vpop.f32.mrf.mxu1 }
 0x3d5   :  { %v395_v44 = vadd.f32 %v393_v42, %v2194_v8  ;;  %v355_v45 = vadd.f32 %v2263_v41, %v344_v43 }
 0x3d6   :  { %v346_v46 = vpop.f32.mrf.mxu1 }
 0x3d7   :  { %1747 = vtanh.f32 %v395_v44  ;;  %v1631_v50 = vmul.f32 -1.442695, %v395_v44  ;;  %v1630_v51 = vmul.f32 -1.442695, %v355_v45 }
 0x3d8   :  { %1749 = vtanh.f32 %v355_v45  ;;  %v347_v47 = vpop.f32.mrf.mxu1 }
 0x3d9   :  { %1751 = vpow2.f32 %v1631_v50 }
 0x3da   :  { %1753 = vpow2.f32 %v1630_v51 }
 0x3e4   :  { %v1748_v48 = vpop.eup %1747 }
 0x3e5   :  { %v1750_v49 = vpop.eup %1749  ;;  %410 = vrot.lane.b32.xlu1 %v1748_v48, %s2069_s17 }
 0x3e6   :  { %365 = vrot.lane.b32.xlu0 %v1750_v49, %s2069_s17  ;;  %v1752_v52 = vpop.eup %1751 }
 0x3e7   :  { %v1754_v53 = vpop.eup %1753  ;;  %v399_v54 = vadd.f32 1.0, %v1752_v52 }
 0x3e8   :  { %v359_v55 = vadd.f32 1.0, %v1754_v53 }
 0x3e9   :  { %1755 = vrcp.f32 %v399_v54 }
 0x3ea   :  { %1757 = vrcp.f32 %v359_v55 }
 0x3f6   :  { %v1756_v57 = vpop.eup %1755 }
 0x3f7   :  { %v1758_v59 = vpop.eup %1757 }
 0x3f8   :  { %v363_v2 = vmul.f32 0.0, %v1758_v59 }
 0x457   :  { %v411_v58 = vpop.permute.xlu1 %410 }
 0x458   :  { %v413_v60 = vmul.f32 %v1756_v57, %v411_v58  ;;  %v366_v61 = vpop.permute.xlu0 %365 }
 0x459   :  { %v368_v62 = vmul.f32 %v1758_v59, %v366_v61 }
 0x45a   :  { %415 = vrot.lane.b32.xlu1 %v413_v60, %s2076_s3 }
 0x45b   :  { %370 = vrot.lane.b32.xlu0 %v368_v62, %s2076_s3 }
 0x45f   :  { %405 = vrot.lane.b32.xlu0 %v404_v1, %s2076_s3 }
 0x4cc   :  { %v416_v7 = vpop.permute.xlu1 %415 }
 0x4cd   :  { %v371_v3 = vpop.permute.xlu0 %370 }
 0x4ce   :  { %v373_v4 = vadd.f32 %v371_v3, %v363_v2 }
 0x4d0   :  { %1759 = vtanh.f32 %v373_v4 }
 0x4d1   :  { %v406_v5 = vpop.permute.xlu0 %405 }
 0x4d2   :  { %v408_v6 = vmul.f32 %v1756_v57, %v406_v5 }
 0x4d4   :  { %v418_v9 = vadd.f32 %v416_v7, %v408_v6 }
 0x4d6   :  { %1761 = vtanh.f32 %v418_v9 }
 0x4dd   :  { %v1760_v10 = vpop.eup %1759 }
 0x4de   :  { %376 = vrot.lane.b32.xlu0 %v1760_v10, %s2069_s17 }
 0x4e3   :  { %v1762_v12 = vpop.eup %1761 }
 0x4e4   :  { %421 = vrot.lane.b32.xlu0 %v1762_v12, %s2069_s17 }
 0x550   :  { %v377_v13 = vpop.permute.xlu0 %376 }
 0x551   :  { %v379_v14 = vmul.f32 %v1758_v59, %v377_v13 }
 0x553   :  { %381 = vrot.lane.b32.xlu1 %v379_v14, %s2076_s3 }
 0x556   :  { %v422_v15 = vpop.permute.xlu0 %421 }
 0x557   :  { %v424_v16 = vmul.f32 %v1756_v57, %v422_v15 }
 0x559   :  { %426 = vrot.lane.b32.xlu1 %v424_v16, %s2076_s3 }
 0x55d   :  { %386 = vrot.lane.b32.xlu1 %v373_v4, %s2078_s1 }
 0x5c5   :  { %v382_v17 = vpop.permute.xlu1 %381 }
 0x5c6   :  { %v2286_v18 = vsel %vm134_vm2, %v382_v17, 0.0 }
 0x5c7   :  { %391 = vst.msk [vmem:[#allocation2] sm:$0x3] %vm390_vm4, %v2286_v18  ;;  %v440_v19 = vrot.slane %v2286_v18, 6 }
 0x5c9   :  { %441 = vrot.lane.b32.xlu0 %v440_v19, %s2076_s3 }
 0x5cb   :  { %v427_v21 = vpop.permute.xlu1 %426 }
 0x5cc   :  { %v2297_v22 = vsel %vm134_vm2, %v427_v21, %v430_v20 }
 0x5cf   :  { %v387_v28 = vpop.permute.xlu1 %386 }
 0x5d0   :  { %v2301_v33 = vsel %vm134_vm2, %v387_v28, 0.0 }
 0x5d1   :  { %501 = vrot.lane.b32.xlu1 %v2301_v33, %s2076_s3 }
 0x63b   :  { %v442_v34 = vpop.permute.xlu0 %441 }
 0x63c   :  { %v444_v36 = vsel %vm262_vm3, %v2297_v22, %v442_v34 }
 0x63d   :  { %v445_v38 = vpack.c.bf16 %v444_v36, %v444_v36 }
 0x63f   :  { %v447_v39 = vrot.slane %v445_v38, 1 }
 0x641   :  { %1632 = vmatmul.mubr.msk.bf16.vlgmr.msra.gmra.mxu0 %vm182_vm1, %v447_v39  ;;  %v533_v39 = vrot.slane %v2301_v33, 6 }
 0x642   :  { %755 = vmatpush1.bf16.msra.mxu0 %v2204_v24  ;;  %778 = vmatprep.mubr.bf16.mxu0 %v2077_v32 }
 0x643   :  { %756 = vmatprep.subr.bf16.mxu0 %v2206_v25  ;;  %v502_v3 = vpop.permute.xlu1 %501 }
 0x646   :  { %757 = vmatpush1.bf16.msra.mxu0 %v2211_v26 }
 0x647   :  { %758 = vmatprep.subr.bf16.mxu0 %v2215_v27 }
 0x64a   :  { %759 = vmatpush1.bf16.msra.mxu0 %v2220_v29 }
 0x64b   :  { %760 = vmatprep.subr.bf16.mxu0 %v2227_v30 }
 0x64e   :  { %761 = vmatpush1.bf16.msra.mxu0 %v2229_v31 }
 0x64f   :  { %1041 = vmatprep.subr.bf16.mxu0 %v2202_v23 }
 0x701   :  { %v485_v37 = vpop.f32.mrf.mxu0 }
 0x702   :  { %v540_v44 = vrot.slane %v485_v37, 4 }
 0x703   :  { %v487_v40 = vpop.f32.mrf.mxu0 }
 0x704   :  { %v492_v42 = vadd.f32 %v2263_v41, %v487_v40  ;;  %v542_v46 = vadd.f32 %v540_v44, %v2194_v8  ;;  %v577_v40 = vrot.slane %v2297_v22, 6 }
 0x705   :  { %v489_v43 = vpop.f32.mrf.mxu0 }
 0x706   :  { %1763 = vtanh.f32 %v492_v42  ;;  %v1633_v49 = vmul.f32 -1.442695, %v492_v42  ;;  %v1634_v50 = vmul.f32 -1.442695, %v542_v46 }
 0x707   :  { %v490_v45 = vpop.f32.mrf.mxu0  ;;  %1765 = vtanh.f32 %v542_v46 }
 0x708   :  { %1767 = vpow2.f32 %v1633_v49 }
 0x709   :  { %1769 = vpow2.f32 %v1634_v50 }
 0x713   :  { %v1764_v47 = vpop.eup %1763 }
 0x714   :  { %506 = vrot.lane.b32.xlu0 %v1764_v47, %s2069_s17  ;;  %v1766_v48 = vpop.eup %1765 }
 0x715   :  { %v1768_v51 = vpop.eup %1767 }
 0x716   :  { %v496_v52 = vadd.f32 1.0, %v1768_v51  ;;  %v1770_v53 = vpop.eup %1769 }
 0x717   :  { %v546_v54 = vadd.f32 1.0, %v1770_v53 }
 0x718   :  { %434 = vrot.lane.b32.xlu0 %v418_v9, %s2078_s1  ;;  %1771 = vrcp.f32 %v496_v52 }
 0x719   :  { %1773 = vrcp.f32 %v546_v54 }
 0x71c   :  { %557 = vrot.lane.b32.xlu0 %v1766_v48, %s2069_s17 }
 0x725   :  { %v1772_v55 = vpop.eup %1771 }
 0x726   :  { %v1774_v61 = vpop.eup %1773  ;;  %v504_v4 = vmul.f32 %v1772_v55, %v502_v3 }
 0x786   :  { %v507_v56 = vpop.permute.xlu0 %506 }
 0x787   :  { %v509_v57 = vmul.f32 %v1772_v55, %v507_v56 }
 0x789   :  { %511 = vrot.lane.b32.xlu1 %v509_v57, %s2076_s3 }
 0x78a   :  { %v435_v58 = vpop.permute.xlu0 %434 }
 0x78b   :  { %v2327_v59 = vsel %vm134_vm2, %v435_v58, %v404_v1 }
 0x78c   :  { %v551_v60 = vrot.slane %v2327_v59, 6 }
 0x78e   :  { %v558_v62 = vpop.permute.xlu0 %557  ;;  %552 = vrot.lane.b32.xlu1 %v551_v60, %s2076_s3 }
 0x78f   :  { %v560_v2 = vmul.f32 %v1774_v61, %v558_v62 }
 0x791   :  { %562 = vrot.lane.b32.xlu0 %v560_v2, %s2076_s3 }
 0x7fb   :  { %v512_v5 = vpop.permute.xlu1 %511 }
 0x7fc   :  { %v514_v6 = vadd.f32 %v512_v5, %v504_v4 }
 0x7fe   :  { %1775 = vtanh.f32 %v514_v6  ;;  %v529_v20 = vrot.slane %v514_v6, 6 }
 0x800   :  { %v553_v63 = vpop.permute.xlu1 %552 }
 0x801   :  { %v555_v7 = vmul.f32 %v1774_v61, %v553_v63 }
 0x803   :  { %v563_v1 = vpop.permute.xlu0 %562 }
 0x804   :  { %v565_v9 = vadd.f32 %v563_v1, %v555_v7 }
 0x806   :  { %1777 = vtanh.f32 %v565_v9 }
 0x80b   :  { %v1776_v10 = vpop.eup %1775 }
 0x80c   :  { %517 = vrot.lane.b32.xlu1 %v1776_v10, %s2069_s17 }
 0x813   :  { %v1778_v12 = vpop.eup %1777 }
 0x814   :  { %568 = vrot.lane.b32.xlu1 %v1778_v12, %s2069_s17 }
 0x87e   :  { %v518_v13 = vpop.permute.xlu1 %517 }
 0x87f   :  { %v520_v14 = vmul.f32 %v1772_v55, %v518_v13 }
 0x881   :  { %v522_v15 = vrot.slane %v520_v14, 6 }
 0x883   :  { %523 = vrot.lane.b32.xlu0 %v522_v15, %s2076_s3 }
 0x886   :  { %v569_v16 = vpop.permute.xlu1 %568 }
 0x887   :  { %v571_v17 = vmul.f32 %v1774_v61, %v569_v16 }
 0x889   :  { %573 = vrot.lane.b32.xlu0 %v571_v17, %s2076_s3 }
 0x88d   :  { %530 = vrot.lane.b32.xlu0 %v529_v20, %s2078_s1 }
 0x8f5   :  { %v524_v21 = vpop.permute.xlu0 %523 }
 0x8f6   :  { %v2343_v28 = vsel %vm134_vm2, %v524_v21, %v440_v19  ;;  %v536_v34 = vsel %vm134_vm2, %v524_v21, 0.0 }
 0x8f7   :  { %538 = vst.msk [vmem:[#allocation2] sm:$0xc] %vm537_vm5, %v536_v34  ;;  %v587_v36 = vrot.slane %v2343_v28, 6 }
 0x8f9   :  { %588 = vrot.lane.b32.xlu1 %v587_v36, %s2076_s3 }
 0x8fb   :  { %v574_v38 = vpop.permute.xlu0 %573 }
 0x8fc   :  { %v2362_v42 = vsel %vm134_vm2, %v574_v38, %v577_v40 }
 0x8ff   :  { %v531_v37 = vpop.permute.xlu0 %530 }
 0x900   :  { %v2355_v18 = vsel %vm134_vm2, %v531_v37, %v533_v39 }
 0x901   :  { %v648_v19 = vrot.slane %v2355_v18, 2 }
 0x903   :  { %649 = vrot.lane.b32.xlu0 %v648_v19, %s2076_s3 }
 0x96b   :  { %v589_v43 = vpop.permute.xlu1 %588 }
 0x96c   :  { %v591_v44 = vsel %vm262_vm3, %v2362_v42, %v589_v43 }
 0x96d   :  { %v592_v33 = vpack.c.bf16 %v591_v44, %v591_v44 }
 0x96f   :  { %v594_v45 = vrot.slane %v592_v33, 2  ;;  %v681_v33 = vrot.slane %v2355_v18, 6 }
 0x971   :  { %1635 = vmatmul.mubr.msk.bf16.vlgmr.msra.gmra.mxu1 %vm182_vm1, %v594_v45 }
 0x972   :  { %898 = vmatpush1.bf16.msra.mxu1 %v2204_v24  ;;  %921 = vmatprep.mubr.bf16.mxu1 %v2077_v32 }
 0x973   :  { %899 = vmatprep.subr.bf16.mxu1 %v2206_v25 }
 0x975   :  { %v650_v1 = vpop.permute.xlu0 %649 }
 0x976   :  { %900 = vmatpush1.bf16.msra.mxu1 %v2211_v26 }
 0x977   :  { %901 = vmatprep.subr.bf16.mxu1 %v2215_v27 }
 0x97a   :  { %902 = vmatpush1.bf16.msra.mxu1 %v2220_v29 }
 0x97b   :  { %903 = vmatprep.subr.bf16.mxu1 %v2227_v30 }
 0x97e   :  { %904 = vmatpush1.bf16.msra.mxu1 %v2229_v31 }
 0x97f   :  { %1187 = vmatprep.subr.bf16.mxu1 %v2202_v23 }
 0xa31   :  { %v632_v22 = vpop.f32.mrf.mxu1 }
 0xa32   :  { %v688_v49 = vrot.slane %v632_v22, 2  ;;  %v725_v22 = vrot.slane %v2362_v42, 6 }
 0xa33   :  { %v634_v46 = vpop.f32.mrf.mxu1 }
 0xa34   :  { %v639_v47 = vadd.f32 %v2263_v41, %v634_v46  ;;  %v690_v51 = vadd.f32 %v688_v49, %v2194_v8 }
 0xa35   :  { %v636_v48 = vpop.f32.mrf.mxu1 }
 0xa36   :  { %1779 = vtanh.f32 %v639_v47  ;;  %v1636_v54 = vmul.f32 -1.442695, %v639_v47  ;;  %v1637_v55 = vmul.f32 -1.442695, %v690_v51 }
 0xa37   :  { %v637_v50 = vpop.f32.mrf.mxu1  ;;  %1781 = vtanh.f32 %v690_v51 }
 0xa38   :  { %1783 = vpow2.f32 %v1636_v54 }
 0xa39   :  { %1785 = vpow2.f32 %v1637_v55 }
 0xa43   :  { %v1780_v52 = vpop.eup %1779 }
 0xa44   :  { %654 = vrot.lane.b32.xlu1 %v1780_v52, %s2069_s17  ;;  %v1782_v53 = vpop.eup %1781 }
 0xa45   :  { %v1784_v56 = vpop.eup %1783 }
 0xa46   :  { %v643_v57 = vadd.f32 1.0, %v1784_v56  ;;  %v1786_v58 = vpop.eup %1785 }
 0xa47   :  { %v694_v61 = vadd.f32 1.0, %v1786_v58 }
 0xa48   :  { %581 = vrot.lane.b32.xlu1 %v565_v9, %s2078_s1  ;;  %1787 = vrcp.f32 %v643_v57 }
 0xa49   :  { %1789 = vrcp.f32 %v694_v61 }
 0xa4c   :  { %705 = vrot.lane.b32.xlu1 %v1782_v53, %s2069_s17 }
 0xa55   :  { %v1788_v8 = vpop.eup %1787 }
 0xa56   :  { %v1790_v6 = vpop.eup %1789  ;;  %v652_v9 = vmul.f32 %v1788_v8, %v650_v1 }
 0xab6   :  { %v655_v62 = vpop.permute.xlu1 %654 }
 0xab7   :  { %v657_v2 = vmul.f32 %v1788_v8, %v655_v62 }
 0xab9   :  { %659 = vrot.lane.b32.xlu0 %v657_v2, %s2076_s3 }
 0xaba   :  { %v582_v3 = vpop.permute.xlu1 %581 }
 0xabb   :  { %v2386_v4 = vsel %vm134_vm2, %v582_v3, %v551_v60 }
 0xabc   :  { %v699_v5 = vrot.slane %v2386_v4, 6 }
 0xabe   :  { %v706_v63 = vpop.permute.xlu1 %705  ;;  %700 = vrot.lane.b32.xlu0 %v699_v5, %s2076_s3 }
 0xabf   :  { %v708_v7 = vmul.f32 %v1790_v6, %v706_v63 }
 0xac1   :  { %710 = vrot.lane.b32.xlu1 %v708_v7, %s2076_s3 }
 0xb2b   :  { %v660_v10 = vpop.permute.xlu0 %659 }
 0xb2c   :  { %v662_v12 = vadd.f32 %v660_v10, %v652_v9 }
 0xb2e   :  { %1791 = vtanh.f32 %v662_v12  ;;  %v677_v39 = vrot.slane %v662_v12, 4 }
 0xb30   :  { %v701_v59 = vpop.permute.xlu0 %700 }
 0xb31   :  { %v703_v13 = vmul.f32 %v1790_v6, %v701_v59 }
 0xb33   :  { %v711_v60 = vpop.permute.xlu1 %710 }
 0xb34   :  { %v713_v14 = vadd.f32 %v711_v60, %v703_v13 }
 0xb36   :  { %1793 = vtanh.f32 %v713_v14 }
 0xb3b   :  { %v1792_v15 = vpop.eup %1791 }
 0xb3c   :  { %665 = vrot.lane.b32.xlu0 %v1792_v15, %s2069_s17 }
 0xb43   :  { %v1794_v16 = vpop.eup %1793 }
 0xb44   :  { %716 = vrot.lane.b32.xlu0 %v1794_v16, %s2069_s17 }
 0xbae   :  { %v666_v17 = vpop.permute.xlu0 %665 }
 0xbaf   :  { %v668_v20 = vmul.f32 %v1788_v8, %v666_v17 }
 0xbb1   :  { %v670_v21 = vrot.slane %v668_v20, 4 }
 0xbb3   :  { %671 = vrot.lane.b32.xlu1 %v670_v21, %s2076_s3 }
 0xbb6   :  { %v717_v34 = vpop.permute.xlu0 %716 }
 0xbb7   :  { %v719_v38 = vmul.f32 %v1790_v6, %v717_v34 }
 0xbb9   :  { %721 = vrot.lane.b32.xlu1 %v719_v38, %s2076_s3 }
 0xbbd   :  { %678 = vrot.lane.b32.xlu1 %v677_v39, %s2078_s1 }
 0xc25   :  { %v672_v37 = vpop.permute.xlu1 %671 }
 0xc26   :  { %v2402_v19 = vsel %vm134_vm2, %v672_v37, %v587_v36  ;;  %v684_v40 = vsel %vm134_vm2, %v672_v37, 0.0 }
 0xc27   :  { %686 = vst.msk [vmem:[#allocation2] sm:$0x30] %vm685_vm6, %v684_v40  ;;  %v735_v43 = vrot.slane %v2402_v19, 6 }
 0xc29   :  { %736 = vrot.lane.b32.xlu0 %v735_v43, %s2076_s3 }
 0xc2b   :  { %v722_v44 = vpop.permute.xlu1 %721 }
 0xc2c   :  { %v2421_v46 = vsel %vm134_vm2, %v722_v44, %v725_v22  ;;  %v2471_v22 = vld [vmem:[#allocation6 + $0x8] sm:$0xff] }
 0xc2d   :  { %vm135_vm8 = vcmp.ne.f32.partialorder %v2471_v22, 0.0  ;;  %v1652_v22 = vld [vmem:[%s2705_s7] ss:$0 sm:$0xff] }
 0xc2f   :  { %v679_v45 = vpop.permute.xlu1 %678 }
 0xc30   :  { %v2414_v28 = vsel %vm134_vm2, %v679_v45, %v681_v33 }
 0xc31   :  { %v796_v36 = vrot.slane %v2414_v28, 4 }
 0xc33   :  { %797 = vrot.lane.b32.xlu1 %v796_v36, %s2076_s3 }
 0xc9b   :  { %v737_v47 = vpop.permute.xlu0 %736 }
 0xc9c   :  { %v739_v48 = vsel %vm262_vm3, %v2421_v46, %v737_v47  ;;  %v870_v47 = vrot.slane %v2421_v46, 6 }
 0xc9d   :  { %v740_v18 = vpack.c.bf16 %v739_v48, %v739_v48 }
 0xc9f   :  { %v742_v49 = vrot.slane %v740_v18, 3 }
 0xca1   :  { %1638 = vmatmul.mubr.msk.bf16.vlgmr.msra.gmra.mxu0 %vm182_vm1, %v742_v49 }
 0xca2   :  { %1042 = vmatpush1.bf16.msra.mxu0 %v2204_v24  ;;  %1065 = vmatprep.mubr.bf16.mxu0 %v2077_v32 }
 0xca3   :  { %1043 = vmatprep.subr.bf16.mxu0 %v2206_v25 }
 0xca5   :  { %v798_v59 = vpop.permute.xlu1 %797 }
 0xca6   :  { %1044 = vmatpush1.bf16.msra.mxu0 %v2211_v26 }
 0xca7   :  { %1045 = vmatprep.subr.bf16.mxu0 %v2215_v27 }
 0xcaa   :  { %1046 = vmatpush1.bf16.msra.mxu0 %v2220_v29 }
 0xcab   :  { %1047 = vmatprep.subr.bf16.mxu0 %v2227_v30 }
 0xcae   :  { %1048 = vmatpush1.bf16.msra.mxu0 %v2229_v31 }
 0xcaf   :  { %1334 = vmatprep.subr.bf16.mxu0 %v2202_v23 }
 0xd61   :  { %v780_v42 = vpop.f32.mrf.mxu0 }
 0xd62   :  { %v835_v54 = vadd.f32 %v780_v42, %v2197_v11 }
 0xd63   :  { %v782_v50 = vpop.f32.mrf.mxu0 }
 0xd64   :  { %v787_v51 = vadd.f32 %v2263_v41, %v782_v50  ;;  %v1640_v23 = vmul.f32 -1.442695, %v835_v54 }
 0xd65   :  { %v784_v52 = vpop.f32.mrf.mxu0 }
 0xd66   :  { %1795 = vtanh.f32 %v787_v51  ;;  %v1639_v57 = vmul.f32 -1.442695, %v787_v51 }
 0xd67   :  { %v785_v53 = vpop.f32.mrf.mxu0  ;;  %1797 = vtanh.f32 %v835_v54 }
 0xd68   :  { %1799 = vpow2.f32 %v1639_v57 }
 0xd69   :  { %1801 = vpow2.f32 %v1640_v23 }
 0xd73   :  { %v1796_v55 = vpop.eup %1795 }
 0xd74   :  { %802 = vrot.lane.b32.xlu0 %v1796_v55, %s2069_s17  ;;  %v1798_v56 = vpop.eup %1797 }
 0xd75   :  { %v1800_v58 = vpop.eup %1799 }
 0xd76   :  { %v791_v61 = vadd.f32 1.0, %v1800_v58  ;;  %v1802_v8 = vpop.eup %1801 }
 0xd77   :  { %v839_v62 = vadd.f32 1.0, %v1802_v8 }
 0xd78   :  { %729 = vrot.lane.b32.xlu0 %v713_v14, %s2078_s1  ;;  %1803 = vrcp.f32 %v791_v61 }
 0xd79   :  { %1805 = vrcp.f32 %v839_v62 }
 0xd7c   :  { %850 = vrot.lane.b32.xlu0 %v1798_v56, %s2069_s17  ;;  %v829_v56 = vrot.slane %v2414_v28, 6 }
 0xd85   :  { %v1804_v2 = vpop.eup %1803 }
 0xd86   :  { %v1806_v9 = vpop.eup %1805  ;;  %v800_v13 = vmul.f32 %v1804_v2, %v798_v59 }
 0xde6   :  { %v803_v3 = vpop.permute.xlu0 %802 }
 0xde7   :  { %v805_v6 = vmul.f32 %v1804_v2, %v803_v3 }
 0xde9   :  { %807 = vrot.lane.b32.xlu1 %v805_v6, %s2076_s3 }
 0xdea   :  { %v730_v63 = vpop.permute.xlu0 %729 }
 0xdeb   :  { %v2445_v7 = vsel %vm134_vm2, %v730_v63, %v699_v5 }
 0xdec   :  { %v844_v1 = vrot.slane %v2445_v7, 6 }
 0xdee   :  { %v851_v10 = vpop.permute.xlu0 %850  ;;  %845 = vrot.lane.b32.xlu1 %v844_v1, %s2076_s3 }
 0xdef   :  { %v853_v12 = vmul.f32 %v1806_v9, %v851_v10 }
 0xdf1   :  { %855 = vrot.lane.b32.xlu0 %v853_v12, %s2076_s3 }
 0xe5b   :  { %v808_v60 = vpop.permute.xlu1 %807 }
 0xe5c   :  { %v810_v14 = vadd.f32 %v808_v60, %v800_v13 }
 0xe5e   :  { %1807 = vtanh.f32 %v810_v14  ;;  %v825_v40 = vrot.slane %v810_v14, 2 }
 0xe60   :  { %v846_v4 = vpop.permute.xlu1 %845 }
 0xe61   :  { %v848_v15 = vmul.f32 %v1806_v9, %v846_v4 }
 0xe63   :  { %v856_v5 = vpop.permute.xlu0 %855 }
 0xe64   :  { %v858_v16 = vadd.f32 %v856_v5, %v848_v15 }
 0xe66   :  { %1809 = vtanh.f32 %v858_v16 }
 0xe6b   :  { %v1808_v17 = vpop.eup %1807 }
 0xe6c   :  { %813 = vrot.lane.b32.xlu1 %v1808_v17, %s2069_s17 }
 0xe73   :  { %v1810_v20 = vpop.eup %1809 }
 0xe74   :  { %861 = vrot.lane.b32.xlu1 %v1810_v20, %s2069_s17 }
 0xede   :  { %v814_v21 = vpop.permute.xlu1 %813 }
 0xedf   :  { %v816_v34 = vmul.f32 %v1804_v2, %v814_v21 }
 0xee1   :  { %v818_v38 = vrot.slane %v816_v34, 2 }
 0xee3   :  { %819 = vrot.lane.b32.xlu0 %v818_v38, %s2076_s3 }
 0xee6   :  { %v862_v39 = vpop.permute.xlu1 %861 }
 0xee7   :  { %v864_v37 = vmul.f32 %v1806_v9, %v862_v39 }
 0xee9   :  { %866 = vrot.lane.b32.xlu0 %v864_v37, %s2076_s3 }
 0xeed   :  { %826 = vrot.lane.b32.xlu0 %v825_v40, %s2078_s1 }
 0xef1   :  { %874 = vrot.lane.b32.xlu0 %v858_v16, %s2078_s1 }
 0xf55   :  { %v820_v44 = vpop.permute.xlu0 %819 }
 0xf56   :  { %v2462_v33 = vsel %vm134_vm2, %v820_v44, %v735_v43  ;;  %v832_v45 = vsel %vm134_vm2, %v820_v44, 0.0 }
 0xf57   :  { %834 = vst.msk [vmem:[#allocation2] sm:$0xc0] %vm833_vm7, %v832_v45  ;;  %v880_v36 = vrot.slane %v2462_v33, 6 }
 0xf59   :  { %881 = vrot.lane.b32.xlu1 %v880_v36, %s2076_s3 }
 0xf5b   :  { %v867_v19 = vpop.permute.xlu0 %866 }
 0xf5c   :  { %v2477_v43 = vsel %vm135_vm8, %v867_v19, %v870_v47 }
 0xf5f   :  { %v827_v55 = vpop.permute.xlu0 %826 }
 0xf60   :  { %v831_v23 = vsel %vm134_vm2, %v827_v55, %v829_v56 }
 0xf61   :  { %v939_v58 = vrot.slane %v831_v23, 6 }
 0xf63   :  { %v875_v35 = vpop.permute.xlu0 %874 }
 0xf64   :  { %v2503_v12 = vsel %vm135_vm8, %v875_v35, %v844_v1 }
 0xf65   :  { %v986_v13 = vrot.slane %v2503_v12, 6 }
 0xfcb   :  { %v882_v48 = vpop.permute.xlu1 %881 }
 0xfcc   :  { %v884_v18 = vsel %vm262_vm3, %v2477_v43, %v882_v48 }
 0xfcd   :  { %v885_v49 = vpack.c.bf16 %v884_v18, %v884_v18 }
 0xfcf   :  { %1641 = vmatmul.mubr.msk.bf16.vlgmr.msra.gmra.mxu1 %vm182_vm1, %v885_v49 }
 0xfd0   :  { %1188 = vmatpush1.bf16.msra.mxu1 %v2204_v24  ;;  %1211 = vmatprep.mubr.bf16.mxu1 %v2077_v32 }
 0xfd1   :  { %1189 = vmatprep.subr.bf16.mxu1 %v2206_v25 }
 0xfd4   :  { %1190 = vmatpush1.bf16.msra.mxu1 %v2211_v26 }
 0xfd5   :  { %1191 = vmatprep.subr.bf16.mxu1 %v2215_v27 }
 0xfd8   :  { %1192 = vmatpush1.bf16.msra.mxu1 %v2220_v29 }
 0xfd9   :  { %1193 = vmatprep.subr.bf16.mxu1 %v2227_v30 }
 0xfdc   :  { %1194 = vmatpush1.bf16.msra.mxu1 %v2229_v31 }
 0xfdd   :  { %1683 = vmatprep.subr.bf16.mxu1 %v2074_v0 }
0x108f   :  { %v923_v46 = vpop.f32.mrf.mxu1 }
0x1090   :  { %v975_v52 = vrot.slane %v923_v46, 6 }
0x1091   :  { %v925_v42 = vpop.f32.mrf.mxu1 }
0x1092   :  { %v930_v50 = vadd.f32 %v2263_v41, %v925_v42  ;;  %v977_v54 = vadd.f32 %v975_v52, %v2197_v11 }
0x1093   :  { %v927_v51 = vpop.f32.mrf.mxu1 }
0x1094   :  { %1811 = vtanh.f32 %v930_v50  ;;  %v1642_v8 = vmul.f32 -1.442695, %v930_v50  ;;  %v1643_v62 = vmul.f32 -1.442695, %v977_v54 }
0x1095   :  { %v928_v53 = vpop.f32.mrf.mxu1  ;;  %1813 = vtanh.f32 %v977_v54 }
0x1096   :  { %1815 = vpow2.f32 %v1642_v8 }
0x1097   :  { %1817 = vpow2.f32 %v1643_v62 }
0x10a1   :  { %v1812_v57 = vpop.eup %1811 }
0x10a2   :  { %945 = vrot.lane.b32.xlu1 %v1812_v57, %s2069_s17  ;;  %v1814_v61 = vpop.eup %1813 }
0x10a3   :  { %v1816_v2 = vpop.eup %1815 }
0x10a4   :  { %v934_v3 = vadd.f32 1.0, %v1816_v2  ;;  %v1818_v28 = vpop.eup %1817 }
0x10a5   :  { %v981_v6 = vadd.f32 1.0, %v1818_v28 }
0x10a6   :  { %940 = vrot.lane.b32.xlu1 %v939_v58, %s2076_s3  ;;  %1819 = vrcp.f32 %v934_v3 }
0x10a7   :  { %1821 = vrcp.f32 %v981_v6 }
0x10aa   :  { %992 = vrot.lane.b32.xlu1 %v1814_v61, %s2069_s17 }
0x10b3   :  { %v1820_v63 = vpop.eup %1819 }
0x10b4   :  { %v1822_v60 = vpop.eup %1821 }
0x1114   :  { %v946_v9 = vpop.permute.xlu1 %945 }
0x1115   :  { %v948_v10 = vmul.f32 %v1820_v63, %v946_v9 }
0x1117   :  { %950 = vrot.lane.b32.xlu0 %v948_v10, %s2076_s3 }
0x1118   :  { %v941_v59 = vpop.permute.xlu1 %940 }
0x1119   :  { %v943_v15 = vmul.f32 %v1820_v63, %v941_v59 }
0x111b   :  { %987 = vrot.lane.b32.xlu0 %v986_v13, %s2076_s3 }
0x111c   :  { %v993_v14 = vpop.permute.xlu1 %992 }
0x111d   :  { %v995_v4 = vmul.f32 %v1822_v60, %v993_v14 }
0x111f   :  { %997 = vrot.lane.b32.xlu1 %v995_v4, %s2076_s3 }
0x1189   :  { %v951_v7 = vpop.permute.xlu0 %950 }
0x118a   :  { %v953_v5 = vadd.f32 %v951_v7, %v943_v15 }
0x118c   :  { %1823 = vtanh.f32 %v953_v5 }
0x118d   :  { %v988_v1 = vpop.permute.xlu0 %987 }
0x118e   :  { %v990_v16 = vmul.f32 %v1822_v60, %v988_v1 }
0x1191   :  { %v998_v17 = vpop.permute.xlu1 %997 }
0x1192   :  { %v1000_v20 = vadd.f32 %v998_v17, %v990_v16 }
0x1194   :  { %1825 = vtanh.f32 %v1000_v20 }
0x1199   :  { %v1824_v21 = vpop.eup %1823 }
0x119a   :  { %956 = vrot.lane.b32.xlu0 %v1824_v21, %s2069_s17 }
0x11a1   :  { %v1826_v34 = vpop.eup %1825 }
0x11a2   :  { %1003 = vrot.lane.b32.xlu0 %v1826_v34, %s2069_s17 }
0x120c   :  { %v957_v38 = vpop.permute.xlu0 %956 }
0x120d   :  { %v959_v39 = vmul.f32 %v1820_v63, %v957_v38 }
0x120f   :  { %961 = vrot.lane.b32.xlu1 %v959_v39, %s2076_s3 }
0x1214   :  { %v1004_v37 = vpop.permute.xlu0 %1003 }
0x1215   :  { %v1006_v40 = vmul.f32 %v1822_v60, %v1004_v37 }
0x1217   :  { %1008 = vrot.lane.b32.xlu1 %v1006_v40, %s2076_s3 }
0x121b   :  { %967 = vrot.lane.b32.xlu1 %v953_v5, %s2078_s1 }
0x1281   :  { %v962_v44 = vpop.permute.xlu1 %961 }
0x1282   :  { %v2520_v45 = vsel %vm135_vm8, %v962_v44, %v880_v36  ;;  %v972_v19 = vsel %vm135_vm8, %v962_v44, 0.0  ;;  %v1012_v36 = vrot.slane %v2477_v43, 6 }
0x1283   :  { %973 = vst.msk [vmem:[#allocation2 + $0x8] sm:$0x3] %vm390_vm4, %v972_v19  ;;  %v1022_v47 = vrot.slane %v2520_v45, 6 }
0x1285   :  { %1023 = vrot.lane.b32.xlu0 %v1022_v47, %s2076_s3 }
0x1289   :  { %v1009_v48 = vpop.permute.xlu1 %1008 }
0x128a   :  { %v2538_v49 = vsel %vm135_vm8, %v1009_v48, %v1012_v36 }
0x128b   :  { %v1158_v19 = vrot.slane %v2538_v49, 6 }
0x128d   :  { %v968_v18 = vpop.permute.xlu1 %967 }
0x128e   :  { %v2531_v33 = vsel %vm135_vm8, %v968_v18, %v939_v58 }
0x128f   :  { %1083 = vrot.lane.b32.xlu1 %v2531_v33, %s2076_s3  ;;  %v1115_v37 = vrot.slane %v2531_v33, 6 }
0x12f7   :  { %v1024_v46 = vpop.permute.xlu0 %1023 }
0x12f8   :  { %v1026_v42 = vsel %vm262_vm3, %v2538_v49, %v1024_v46 }
0x12f9   :  { %v1027_v50 = vpack.c.bf16 %v1026_v42, %v1026_v42 }
0x12fb   :  { %v1029_v51 = vrot.slane %v1027_v50, 1 }
0x12fd   :  { %1644 = vmatmul.mubr.msk.bf16.vlgmr.msra.gmra.mxu0 %vm182_vm1, %v1029_v51 }
0x12fe   :  { %1335 = vmatpush1.bf16.msra.mxu0 %v2204_v24  ;;  %1358 = vmatprep.mubr.bf16.mxu0 %v2077_v32 }
0x12ff   :  { %1336 = vmatprep.subr.bf16.mxu0 %v2206_v25 }
0x1301   :  { %v1084_v35 = vpop.permute.xlu1 %1083 }
0x1302   :  { %1337 = vmatpush1.bf16.msra.mxu0 %v2211_v26 }
0x1303   :  { %1338 = vmatprep.subr.bf16.mxu0 %v2215_v27 }
0x1306   :  { %1339 = vmatpush1.bf16.msra.mxu0 %v2220_v29 }
0x1307   :  { %1340 = vmatprep.subr.bf16.mxu0 %v2227_v30 }
0x130a   :  { %1341 = vmatpush1.bf16.msra.mxu0 %v2229_v31 }
0x13bd   :  { %v1067_v43 = vpop.f32.mrf.mxu0 }
0x13be   :  { %v1121_v24 = vrot.slane %v1067_v43, 4 }
0x13bf   :  { %v1069_v52 = vpop.f32.mrf.mxu0 }
0x13c0   :  { %v1074_v53 = vadd.f32 %v2263_v41, %v1069_v52  ;;  %v1123_v25 = vadd.f32 %v1121_v24, %v2197_v11 }
0x13c1   :  { %v1071_v54 = vpop.f32.mrf.mxu0 }
0x13c2   :  { %1827 = vtanh.f32 %v1074_v53  ;;  %v1645_v29 = vmul.f32 -1.442695, %v1074_v53  ;;  %v1646_v30 = vmul.f32 -1.442695, %v1123_v25 }
0x13c3   :  { %v1072_v32 = vpop.f32.mrf.mxu0  ;;  %1829 = vtanh.f32 %v1123_v25 }
0x13c4   :  { %1831 = vpow2.f32 %v1645_v29 }
0x13c5   :  { %1833 = vpow2.f32 %v1646_v30 }
0x13cf   :  { %v1828_v26 = vpop.eup %1827 }
0x13d0   :  { %1088 = vrot.lane.b32.xlu0 %v1828_v26, %s2069_s17  ;;  %v1830_v27 = vpop.eup %1829 }
0x13d1   :  { %v1832_v31 = vpop.eup %1831 }
0x13d2   :  { %v1078_v55 = vadd.f32 1.0, %v1832_v31  ;;  %v1834_v56 = vpop.eup %1833 }
0x13d3   :  { %v1127_v57 = vadd.f32 1.0, %v1834_v56 }
0x13d4   :  { %1016 = vrot.lane.b32.xlu0 %v1000_v20, %s2078_s1  ;;  %1835 = vrcp.f32 %v1078_v55 }
0x13d5   :  { %1837 = vrcp.f32 %v1127_v57 }
0x13d8   :  { %1138 = vrot.lane.b32.xlu0 %v1830_v27, %s2069_s17 }
0x13e1   :  { %v1836_v23 = vpop.eup %1835 }
0x13e2   :  { %v1838_v3 = vpop.eup %1837  ;;  %v1086_v63 = vmul.f32 %v1836_v23, %v1084_v35 }
0x1442   :  { %v1089_v58 = vpop.permute.xlu0 %1088 }
0x1443   :  { %v1091_v61 = vmul.f32 %v1836_v23, %v1089_v58 }
0x1445   :  { %1093 = vrot.lane.b32.xlu1 %v1091_v61, %s2076_s3 }
0x1446   :  { %v1017_v8 = vpop.permute.xlu0 %1016 }
0x1447   :  { %v2561_v62 = vsel %vm135_vm8, %v1017_v8, %v986_v13 }
0x1448   :  { %v1132_v2 = vrot.slane %v2561_v62, 6 }
0x144a   :  { %v1139_v28 = vpop.permute.xlu0 %1138  ;;  %1133 = vrot.lane.b32.xlu1 %v1132_v2, %s2076_s3 }
0x144b   :  { %v1141_v6 = vmul.f32 %v1838_v3, %v1139_v28 }
0x144d   :  { %1143 = vrot.lane.b32.xlu0 %v1141_v6, %s2076_s3 }
0x14b7   :  { %v1094_v9 = vpop.permute.xlu1 %1093 }
0x14b8   :  { %v1096_v10 = vadd.f32 %v1094_v9, %v1086_v63 }
0x14ba   :  { %1839 = vtanh.f32 %v1096_v10  ;;  %v1111_v17 = vrot.slane %v1096_v10, 6 }
0x14bc   :  { %v1134_v12 = vpop.permute.xlu1 %1133 }
0x14bd   :  { %v1136_v59 = vmul.f32 %v1838_v3, %v1134_v12 }
0x14bf   :  { %v1144_v13 = vpop.permute.xlu0 %1143 }
0x14c0   :  { %v1146_v60 = vadd.f32 %v1144_v13, %v1136_v59 }
0x14c2   :  { %1841 = vtanh.f32 %v1146_v60 }
0x14c7   :  { %v1840_v14 = vpop.eup %1839 }
0x14c8   :  { %1099 = vrot.lane.b32.xlu1 %v1840_v14, %s2069_s17 }
0x14cf   :  { %v1842_v4 = vpop.eup %1841 }
0x14d0   :  { %1149 = vrot.lane.b32.xlu1 %v1842_v4, %s2069_s17 }
0x153a   :  { %v1100_v15 = vpop.permute.xlu1 %1099 }
0x153b   :  { %v1102_v7 = vmul.f32 %v1836_v23, %v1100_v15 }
0x153d   :  { %v1104_v5 = vrot.slane %v1102_v7, 6 }
0x153f   :  { %1105 = vrot.lane.b32.xlu0 %v1104_v5, %s2076_s3 }
0x1542   :  { %v1150_v1 = vpop.permute.xlu1 %1149 }
0x1543   :  { %v1152_v16 = vmul.f32 %v1838_v3, %v1150_v1 }
0x1545   :  { %1154 = vrot.lane.b32.xlu0 %v1152_v16, %s2076_s3 }
0x1549   :  { %1112 = vrot.lane.b32.xlu0 %v1111_v17, %s2078_s1 }
0x15b1   :  { %v1106_v20 = vpop.permute.xlu0 %1105 }
0x15b2   :  { %v2577_v21 = vsel %vm135_vm8, %v1106_v20, %v1022_v47  ;;  %v1118_v34 = vsel %vm135_vm8, %v1106_v20, 0.0 }
0x15b3   :  { %1119 = vst.msk [vmem:[#allocation2 + $0x8] sm:$0xc] %vm537_vm5, %v1118_v34  ;;  %v1168_v38 = vrot.slane %v2577_v21, 6 }
0x15b5   :  { %1169 = vrot.lane.b32.xlu1 %v1168_v38, %s2076_s3 }
0x15b7   :  { %v1155_v39 = vpop.permute.xlu0 %1154 }
0x15b8   :  { %v2596_v47 = vsel %vm135_vm8, %v1155_v39, %v1158_v19 }
0x15b9   :  { %v1305_v1 = vrot.slane %v2596_v47, 6 }
0x15bb   :  { %v1113_v40 = vpop.permute.xlu0 %1112 }
0x15bc   :  { %v2589_v44 = vsel %vm135_vm8, %v1113_v40, %v1115_v37 }
0x15bd   :  { %v1229_v45 = vrot.slane %v2589_v44, 2  ;;  %v1262_v20 = vrot.slane %v2589_v44, 6  ;;  %v1871_v44 = vld [vmem:[%s2703_s5] ss:$0 sm:$0xff] }
0x15bf   :  { %1230 = vrot.lane.b32.xlu0 %v1229_v45, %s2076_s3 }
0x1627   :  { %v1170_v48 = vpop.permute.xlu1 %1169 }
0x1628   :  { %v1172_v18 = vsel %vm262_vm3, %v2596_v47, %v1170_v48 }
0x1629   :  { %v1173_v33 = vpack.c.bf16 %v1172_v18, %v1172_v18 }
0x162b   :  { %v1175_v36 = vrot.slane %v1173_v33, 2 }
0x162d   :  { %1647 = vmatmul.mubr.msk.bf16.vlgmr.msra.gmra.mxu1 %vm182_vm1, %v1175_v36 }
0x162e   :  { %1687 = vmatprep.mubr.msk.bf16.mxu1 %vm2075_vm0, %v2074_v0 }
0x1631   :  { %v1231_v61 = vpop.permute.xlu0 %1230 }
0x16ed   :  { %v1213_v46 = vpop.f32.mrf.mxu1 }
0x16ee   :  { %v1268_v51 = vrot.slane %v1213_v46, 2 }
0x16ef   :  { %v1215_v42 = vpop.f32.mrf.mxu1 }
0x16f0   :  { %v1220_v50 = vadd.f32 %v2263_v41, %v1215_v42  ;;  %v1270_v52 = vadd.f32 %v1268_v51, %v2197_v11 }
0x16f1   :  { %v1217_v49 = vpop.f32.mrf.mxu1 }
0x16f2   :  { %1843 = vtanh.f32 %v1220_v50  ;;  %v1648_v24 = vmul.f32 -1.442695, %v1220_v50  ;;  %v1649_v32 = vmul.f32 -1.442695, %v1270_v52 }
0x16f3   :  { %v1218_v43 = vpop.f32.mrf.mxu1  ;;  %1845 = vtanh.f32 %v1270_v52 }
0x16f4   :  { %1847 = vpow2.f32 %v1648_v24 }
0x16f5   :  { %1849 = vpow2.f32 %v1649_v32 }
0x16ff   :  { %v1844_v53 = vpop.eup %1843 }
0x1700   :  { %1235 = vrot.lane.b32.xlu1 %v1844_v53, %s2069_s17  ;;  %v1846_v54 = vpop.eup %1845 }
0x1701   :  { %v1848_v41 = vpop.eup %1847 }
0x1702   :  { %v1224_v25 = vadd.f32 1.0, %v1848_v41  ;;  %v1850_v26 = vpop.eup %1849  ;;  %v1735_v41 = vld [vmem:[#allocation11 + $0x8] sm:$0xff]  }
0x1703   :  { %v1274_v27 = vadd.f32 1.0, %v1850_v26  ;;  %1684 = vmatpush3.bf16.msra.mxu1 %v1735_v41 }
0x1704   :  { %1162 = vrot.lane.b32.xlu1 %v1146_v60, %s2078_s1  ;;  %1851 = vrcp.f32 %v1224_v25  ;;  %1685 = vmatprep.subr.bf16.mxu1 %v2074_v0  ;;  %v1736_v25 = vld [vmem:[#allocation11] sm:$0xff]  }
0x1705   :  { %1853 = vrcp.f32 %v1274_v27 }
0x1707   :  { %1686 = vmatpush3.bf16.msra.mxu1 %v1736_v25 }
0x1708   :  { %1285 = vrot.lane.b32.xlu1 %v1846_v54, %s2069_s17  ;;  %1691 = vmatprep.subr.bf16.mxu1 %v2074_v0 }
0x1711   :  { %v1852_v11 = vpop.eup %1851 }
0x1712   :  { %v1854_v57 = vpop.eup %1853  ;;  %v1233_v8 = vmul.f32 %v1852_v11, %v1231_v61 }
0x1772   :  { %v1236_v29 = vpop.permute.xlu1 %1235 }
0x1773   :  { %v1238_v30 = vmul.f32 %v1852_v11, %v1236_v29 }
0x1775   :  { %1240 = vrot.lane.b32.xlu0 %v1238_v30, %s2076_s3 }
0x1776   :  { %v1163_v31 = vpop.permute.xlu1 %1162 }
0x1777   :  { %v2613_v55 = vsel %vm135_vm8, %v1163_v31, %v1132_v2 }
0x1778   :  { %v1279_v56 = vrot.slane %v2613_v55, 6 }
0x177a   :  { %v1286_v23 = vpop.permute.xlu1 %1285  ;;  %1280 = vrot.lane.b32.xlu0 %v1279_v56, %s2076_s3 }
0x177b   :  { %v1288_v58 = vmul.f32 %v1854_v57, %v1286_v23 }
0x177d   :  { %1290 = vrot.lane.b32.xlu1 %v1288_v58, %s2076_s3 }
0x17e7   :  { %v1241_v3 = vpop.permute.xlu0 %1240 }
0x17e8   :  { %v1243_v28 = vadd.f32 %v1241_v3, %v1233_v8  ;;  %v1419_v8 = vld [vmem:[#allocation2] sm:$0xff] }
0x17ea   :  { %1855 = vtanh.f32 %v1243_v28  ;;  %v1258_v14 = vrot.slane %v1243_v28, 4 }
0x17ec   :  { %v1281_v62 = vpop.permute.xlu0 %1280 }
0x17ed   :  { %v1283_v6 = vmul.f32 %v1854_v57, %v1281_v62  ;;  %v1737_v62 = vld [vmem:[#allocation12 + $0x8] sm:$0xff]  }
0x17ef   :  { %v1291_v2 = vpop.permute.xlu1 %1290 }
0x17f0   :  { %v1293_v35 = vadd.f32 %v1291_v2, %v1283_v6  ;;  %v1738_v6 = vld [vmem:[#allocation12] sm:$0xff]  }
0x17f2   :  { %1857 = vtanh.f32 %v1293_v35 }
0x17f7   :  { %v1856_v63 = vpop.eup %1855 }
0x17f8   :  { %1246 = vrot.lane.b32.xlu0 %v1856_v63, %s2069_s17 }
0x17ff   :  { %v1858_v9 = vpop.eup %1857 }
0x1800   :  { %1296 = vrot.lane.b32.xlu0 %v1858_v9, %s2069_s17 }
0x186a   :  { %v1247_v10 = vpop.permute.xlu0 %1246 }
0x186b   :  { %v1249_v12 = vmul.f32 %v1852_v11, %v1247_v10 }
0x186d   :  { %v1251_v59 = vrot.slane %v1249_v12, 4 }
0x186f   :  { %1252 = vrot.lane.b32.xlu1 %v1251_v59, %s2076_s3 }
0x1872   :  { %v1297_v13 = vpop.permute.xlu0 %1296 }
0x1873   :  { %v1299_v60 = vmul.f32 %v1854_v57, %v1297_v13 }
0x1875   :  { %1301 = vrot.lane.b32.xlu1 %v1299_v60, %s2076_s3 }
0x1879   :  { %1259 = vrot.lane.b32.xlu1 %v1258_v14, %s2078_s1 }
0x18e1   :  { %v1253_v4 = vpop.permute.xlu1 %1252 }
0x18e2   :  { %v2629_v15 = vsel %vm135_vm8, %v1253_v4, %v1168_v38  ;;  %v1265_v7 = vsel %vm135_vm8, %v1253_v4, 0.0 }
0x18e3   :  { %1266 = vst.msk [vmem:[#allocation2 + $0x8] sm:$0x30] %vm685_vm6, %v1265_v7  ;;  %v1315_v5 = vrot.slane %v2629_v15, 6 }
0x18e5   :  { %1316 = vrot.lane.b32.xlu0 %v1315_v5, %s2076_s3 }
0x18e7   :  { %v1302_v16 = vpop.permute.xlu1 %1301 }
0x18e8   :  { %v1307_v17 = vsel %vm135_vm8, %v1302_v16, %v1305_v1 }
0x18e9   :  { %1413 = vst.msk [vmem:[#allocation15 - $0x6] sm:$0xc0] %vm833_vm7, %v1307_v17 }
0x18eb   :  { %v1260_v21 = vpop.permute.xlu1 %1259 }
0x18ec   :  { %v1264_v34 = vsel %vm135_vm8, %v1260_v21, %v1262_v20 }
0x18ed   :  { %v1375_v38 = vrot.slane %v1264_v34, 4  ;;  %v1408_v55 = vrot.slane %v1264_v34, 6 }
0x18ef   :  { %1376 = vrot.lane.b32.xlu1 %v1375_v38, %s2076_s3 }
0x1957   :  { %v1317_v39 = vpop.permute.xlu0 %1316 }
0x1958   :  { %v1319_v37 = vsel %vm262_vm3, %v1307_v17, %v1317_v39 }
0x1959   :  { %v1320_v40 = vpack.c.bf16 %v1319_v37, %v1319_v37 }
0x195b   :  { %v1322_v45 = vrot.slane %v1320_v40, 3 }
0x195d   :  { %1650 = vmatmul.mubr.msk.bf16.vlgmr.msra.gmra.mxu0 %vm182_vm1, %v1322_v45 }
0x1961   :  { %v1377_v52 = vpop.permute.xlu1 %1376 }
0x1a1d   :  { %v1360_v19 = vpop.f32.mrf.mxu0 }
0x1a1f   :  { %v1361_v47 = vpop.f32.mrf.mxu0 }
0x1a20   :  { %v1366_v48 = vadd.f32 %v1871_v44, %v1361_v47 }
0x1a21   :  { %v1363_v18 = vpop.f32.mrf.mxu0 }
0x1a22   :  { %1859 = vtanh.f32 %v1366_v48  ;;  %v1651_v46 = vmul.f32 -1.442695, %v1366_v48 }
0x1a23   :  { %v1364_v33 = vpop.f32.mrf.mxu0 }
0x1a24   :  { %1861 = vpow2.f32 %v1651_v46 }
0x1a2f   :  { %v1860_v36 = vpop.eup %1859 }
0x1a30   :  { %1381 = vrot.lane.b32.xlu0 %v1860_v36, %s2069_s17 }
0x1a31   :  { %v1862_v42 = vpop.eup %1861 }
0x1a32   :  { %v1370_v50 = vadd.f32 1.0, %v1862_v42 }
0x1a34   :  { %1863 = vrcp.f32 %v1370_v50 }
0x1a41   :  { %v1864_v49 = vpop.eup %1863 }
0x1a42   :  { %v1379_v53 = vmul.f32 %v1864_v49, %v1377_v52 }
0x1aa2   :  { %v1382_v51 = vpop.permute.xlu0 %1381 }
0x1aa3   :  { %v1384_v43 = vmul.f32 %v1864_v49, %v1382_v51 }
0x1aa5   :  { %1386 = vrot.lane.b32.xlu0 %v1384_v43, %s2076_s3 }
0x1b17   :  { %v1387_v54 = vpop.permute.xlu0 %1386 }
0x1b18   :  { %v1389_v24 = vadd.f32 %v1387_v54, %v1379_v53 }
0x1b1a   :  { %1865 = vtanh.f32 %v1389_v24  ;;  %v1404_v31 = vrot.slane %v1389_v24, 2 }
0x1b27   :  { %v1866_v32 = vpop.eup %1865 }
0x1b28   :  { %1392 = vrot.lane.b32.xlu1 %v1866_v32, %s2069_s17 }
0x1b2c   :  { %1309 = vrot.lane.b32.xlu1 %v1293_v35, %s2078_s1 }
0x1b9a   :  { %v1393_v26 = vpop.permute.xlu1 %1392 }
0x1b9b   :  { %v1395_v27 = vmul.f32 %v1864_v49, %v1393_v26 }
0x1b9d   :  { %v1397_v11 = vrot.slane %v1395_v27, 2 }
0x1b9e   :  { %v1310_v29 = vpop.permute.xlu1 %1309 }
0x1b9f   :  { %v1313_v30 = vsel %vm135_vm8, %v1310_v29, %v1279_v56  ;;  %1398 = vrot.lane.b32.xlu0 %v1397_v11, %s2076_s3 }
0x1ba0   :  { %1416 = vst.msk [vmem:[#allocation17 - $0x6] sm:$0xc0] %vm833_vm7, %v1313_v30 }
0x1ba3   :  { %1405 = vrot.lane.b32.xlu0 %v1404_v31, %s2078_s1 }
0x1c11   :  { %v1399_v57 = vpop.permute.xlu0 %1398 }
0x1c12   :  { %v1402_v23 = vsel %vm135_vm8, %v1399_v57, %v1315_v5  ;;  %v1411_v58 = vsel %vm135_vm8, %v1399_v57, 0.0 }
0x1c13   :  { %1412 = vst.msk [vmem:[#allocation2 + $0x8] sm:$0xc0] %vm833_vm7, %v1411_v58  ;;  %1415 = vst.msk [vmem:[#allocation15 - $0x4] sm:$0xc0] %vm833_vm7, %v1402_v23 }
0x1c15   :  { %v1406_v56 = vpop.permute.xlu0 %1405 }
0x1c16   :  { %v1410_v61 = vsel %vm135_vm8, %v1406_v56, %v1408_v55 }
0x1c17   :  { %1418 = vst.msk [vmem:[#allocation17 - $0x4] sm:$0xc0] %vm833_vm7, %v1410_v61 }
0x1c1a   :  { %v1420_v3 = vld [vmem:[#allocation2 + $0x8] sm:$0xff] }
0x1c1b   :  { %v1421_v28 = vpack.c.bf16 %v1420_v3, %v1419_v8 }
0x1c1d   :  { %1688 = vmatmul.mubr.msk.bf16.vlgmr.msra.gmra.mxu1 %vm262_vm3, %v1421_v28 }
0x1c1e   :  { %1695 = vmatprep.mubr.msk.bf16.mxu1 %vm2075_vm0, %v2074_v0  ;;  %1692 = vmatpush3.bf16.msra.mxu1 %v1737_v62 }
0x1c1f   :  { %1693 = vmatprep.subr.bf16.mxu1 %v2074_v0 }
0x1c22   :  { %1694 = vmatpush3.bf16.msra.mxu1 %v1738_v6 }
0x1cdd   :  { %v1482_v2 = vpop.f32.mrf.mxu1 }
0x1cde   :  { %v1483_v35 = vadd.f32 %v1652_v22, %v1482_v2 }
0x1cdf   :  { %v1689_v63 = vpop.f32.mrf.mxu1 }
0x1ce0   :  { %1867 = vtanh.f32 %v1483_v35 }
0x1ce1   :  { %v1485_v9 = vpop.f32.mrf.mxu1 }
0x1ce2   :  { %v1486_v10 = vadd.f32 %v1652_v22, %v1485_v9 }
0x1ce3   :  { %v1690_v12 = vpop.f32.mrf.mxu1 }
0x1ce4   :  { %1869 = vtanh.f32 %v1486_v10 }
0x1ced   :  { %v1868_v59 = vpop.eup %1867 }
0x1cf1   :  { %v1870_v13 = vpop.eup %1869 }
0x1cf2   :  { %v1491_v60 = vpack.c.bf16 %v1870_v13, %v1868_v59 }
0x1cf4   :  { %1696 = vmatmul.mubr.msk.bf16.vlgmr.msra.gmra.mxu1 %vm262_vm3, %v1491_v60 }
0x1cf5   :  { %2003 = shalt.err (!%p2000_p6)
}
0x1cf6   :  { %s2080_s7 = smov 2   ;;  %s2081_s28 = smov [#allocation17]  }
0x1cf7   :  { %1584 = dma.vmem_to_hbm [thread:$0]  %s1579_s4, 64, %s2709_s11, [#allocation16], %s2076_s3, %s2076_s3, %s2080_s7  }
0x1cf8   :  { %s1590_s0 = sshll.u32 %s2081_s28, 4  ;;  %s1591_s0 = int_to_ptr.vmem [resolvable:$true] %s1590_s0 }
0x1cf9   :  { %s2012_s29 = scalar_lea.vmem %s1591_s0, 64  ;;  %p2017_p8 = scmp.lt.s32.totalorder %s1591_s0, %s1591_s0 }
0x1cfa   :  { %p2013_p7 = scmp.ne.s32.totalorder %s1591_s0, %s2012_s29  ;;  %p2018_p9 = scmp.lt.s32.totalorder %s2012_s29, %s2012_s29 }
0x1cfc   :  { %p2019_p10 = por %p2018_p9, %p2017_p8 }
0x1cfe   :  { %p2020_p11 = pnand %p2019_p10, %p2013_p7 }
0x1d00   :  { %2023 = shalt.err (!%p2020_p11)
}
0x1d01   :  { %1596 = dma.vmem_to_hbm [thread:$0]  %s1591_s0, 64, %s2710_s12, [#allocation16], %s2076_s3, %s2076_s3, %s2080_s7  }
0x1d02   :  { %v1656_v0 = vld [vmem:[%s2707_s9] ss:$0 sm:$0xff]  ;;  %s2082_s11 = smov [#allocation14]  }
0x1d03   :  { %s1566_s2 = sshll.u32 %s2082_s11, 4  ;;  %s1567_s2 = int_to_ptr.vmem [resolvable:$true] %s1566_s2 }
0x1d04   :  { %s2032_s16 = scalar_lea.vmem %s1567_s2, 256  ;;  %p2037_p13 = scmp.lt.s32.totalorder %s1567_s2, %s1567_s2 }
0x1d05   :  { %p2033_p12 = scmp.ne.s32.totalorder %s1567_s2, %s2032_s16  ;;  %p2038_p0 = scmp.lt.s32.totalorder %s2032_s16, %s2032_s16 }
0x1d07   :  { %p2039_p1 = por %p2038_p0, %p2037_p13 }
0x1d09   :  { %p2040_p2 = pnand %p2039_p1, %p2033_p12 }
0x1db4   :  { %v1552_v14 = vpop.f32.mrf.mxu1 }
0x1db5   :  { %v1553_v4 = vadd.f32 %v1656_v0, %v1552_v14 }
0x1db6   :  { %v1697_v15 = vpop.f32.mrf.mxu1 }
0x1db7   :  { %1559 = vst [vmem:[#allocation14] sm:$0xff] %v1553_v4 }
0x1db8   :  { %v1555_v7 = vpop.f32.mrf.mxu1 }
0x1db9   :  { %v1556_v5 = vadd.f32 %v1656_v0, %v1555_v7 }
0x1dba   :  { %v1698_v1 = vpop.f32.mrf.mxu1 }
0x1dbb   :  { %1560 = vst [vmem:[#allocation14 + $0x8] sm:$0xff] %v1556_v5 }
0x1dbc   :  { %2043 = shalt.err (!%p2040_p2)
}
0x1dbd   :  { %1572 = dma.vmem_to_hbm [thread:$0]  %s1567_s2, 256, %s2708_s10, [#allocation5], %s2065_s24, %s2065_s24, %s2066_s25  }
0x1dbe   :  { %2060 = dma.done.wait [#allocation5], 256  }
0x1dbf   :  { %2061 = vsyncadd [#allocation5], 4294967040 }
0x1dc0   :  { %2062 = dma.done.wait [#allocation16], 128  }
0x1dc1   :  { %2063 = vsyncadd [#allocation16], 4294967168 }
0x1dc2   :  { %1606 = vsyncpa [#allocation4], 1 }
0x1dc3   :  { %1607 = vsyncpa [#allocation7], 1 }
0x1dc4   :  { %1608 = vsyncpa [#allocation10], 1 }
0x1dc5   :  { %1609 = vsyncpa [#allocation13], 1 }
0x1dc6   :  { %1610 = vsyncpa [#allocation5], 1 }
0x1dc7   :  { %1611 = vsyncpa [#allocation16], 1 }

</bundles_post_ra>
